<compile_context>
chip_gen: v7x
topology: tpu7x:2x2x1
jax: 0.10.0
libtpu: 0.0.40
codegen_flags: <defaults>
</compile_context>

<pallas_src>
import functools

import jax
import jax.numpy as jnp
import numpy as np
from jax.experimental import pallas as pl
from jax.experimental.pallas import tpu as pltpu

_VMEM_LIMIT = 32 * 1024 * 1024   # explicit scoped-VMEM budget (safe on v5e/v6e/v7x)
_TM = 256                        # GEMM row tile (review: 256-512, modest for v5e)


def _round_up(x, m):
    return (x + m - 1) // m * m


def _conv_out(s, k, st):
    return (s - k) // st + 1


# ----------------------------------------------------------------------------
# Pallas kernels
# ----------------------------------------------------------------------------
def _gemm_bias_act_kernel(x_ref, w_ref, b_ref, o_ref, *, relu):
    # x: [TM, K] bf16, w: [K, N] bf16, b: [1, N] f32 -> o: [TM, N]
    acc = jnp.dot(x_ref[...], w_ref[...], preferred_element_type=jnp.float32)
    acc = acc + b_ref[...]
    if relu:
        acc = jnp.maximum(acc, 0.0)
    o_ref[...] = acc.astype(o_ref.dtype)


def matmul_bias_act(x, w, b, *, relu, out_dtype=jnp.bfloat16):
    """o = relu?(x @ w + b), tiled over rows with a parallel grid.

    x: (M, K) bf16, w: (K, N) bf16, b: (1, N) f32.  M is zero-padded up to a
    multiple of the row tile; K/N stay whole (K <= 576, N <= 64 here).
    """
    M, K = x.shape
    N = w.shape[1]
    tm = min(_TM, _round_up(M, 8))
    m_pad = _round_up(M, tm)
    if m_pad != M:
        x = jnp.pad(x, ((0, m_pad - M), (0, 0)))

    out_isz = np.dtype(out_dtype).itemsize
    cost = pl.CostEstimate(
        flops=2 * m_pad * K * N,
        transcendentals=0,
        bytes_accessed=(m_pad * K * x.dtype.itemsize + K * N * w.dtype.itemsize
                        + N * 4 + m_pad * N * out_isz),
    )
    out = pl.pallas_call(
        functools.partial(_gemm_bias_act_kernel, relu=relu),
        out_shape=jax.ShapeDtypeStruct((m_pad, N), out_dtype),
        grid=(m_pad // tm,),
        in_specs=[
            pl.BlockSpec((tm, K), lambda i: (i, 0)),
            pl.BlockSpec((K, N), lambda i: (0, 0)),
            pl.BlockSpec((1, N), lambda i: (0, 0)),
        ],
        out_specs=pl.BlockSpec((tm, N), lambda i: (i, 0)),
        compiler_params=pltpu.CompilerParams(
            dimension_semantics=("parallel",),
            vmem_limit_bytes=_VMEM_LIMIT,
        ),
        cost_estimate=cost,
    )(x, w, b)
    return out[:M] if m_pad != M else out


def _head_kernel(f_ref, aw1_ref, ab1_ref, vw1_ref, vb1_ref,
                 w2a_ref, w2v_ref, b2_ref, o_ref, *, batch, num_actions):
    # Fused dueling head: feats -> adv1(relu) -> adv2, feats -> val1(relu) -> val2,
    # then q = value + adv - mean(adv)  (GLOBAL mean over batch x actions, as in
    # the PyTorch module's `advantage.mean()`).
    f = f_ref[...]                                                    # (Bp, F) bf16
    h_adv = jnp.dot(f, aw1_ref[...], preferred_element_type=jnp.float32) + ab1_ref[...]
    h_adv = jnp.maximum(h_adv, 0.0).astype(jnp.bfloat16)              # (Bp, 512)
    h_val = jnp.dot(f, vw1_ref[...], preferred_element_type=jnp.float32) + vb1_ref[...]
    h_val = jnp.maximum(h_val, 0.0).astype(jnp.bfloat16)              # (Bp, 512)

    # Lane-dense padded output slab: cols [0, A) = advantage, col A = value.
    pre = (jnp.dot(h_adv, w2a_ref[...], preferred_element_type=jnp.float32)
           + jnp.dot(h_val, w2v_ref[...], preferred_element_type=jnp.float32)
           + b2_ref[...])                                             # (Bp, P) f32

    rows = jax.lax.broadcasted_iota(jnp.int32, pre.shape, 0)
    cols = jax.lax.broadcasted_iota(jnp.int32, pre.shape, 1)
    adv_mask = (rows < batch) & (cols < num_actions)
    adv_mean = jnp.sum(jnp.where(adv_mask, pre, 0.0)) * (1.0 / (batch * num_actions))

    value = pre[:, num_actions:num_actions + 1]                       # (Bp, 1)
    o_ref[...] = (value + pre - adv_mean).astype(o_ref.dtype)


def dueling_head(feats_padded, kp, *, batch, num_actions):
    b_pad, f_dim = feats_padded.shape
    hidden = kp["adv1_w"].shape[1]
    p_lanes = kp["head2_w_adv"].shape[1]
    out = pl.pallas_call(
        functools.partial(_head_kernel, batch=batch, num_actions=num_actions),
        out_shape=jax.ShapeDtypeStruct((b_pad, p_lanes), jnp.float32),
        in_specs=[
            pl.BlockSpec((b_pad, f_dim), lambda: (0, 0)),
            pl.BlockSpec((f_dim, hidden), lambda: (0, 0)),
            pl.BlockSpec((1, hidden), lambda: (0, 0)),
            pl.BlockSpec((f_dim, hidden), lambda: (0, 0)),
            pl.BlockSpec((1, hidden), lambda: (0, 0)),
            pl.BlockSpec((hidden, p_lanes), lambda: (0, 0)),
            pl.BlockSpec((hidden, p_lanes), lambda: (0, 0)),
            pl.BlockSpec((1, p_lanes), lambda: (0, 0)),
        ],
        out_specs=pl.BlockSpec((b_pad, p_lanes), lambda: (0, 0)),
        compiler_params=pltpu.CompilerParams(vmem_limit_bytes=_VMEM_LIMIT),
    )(feats_padded, kp["adv1_w"], kp["adv1_b"], kp["val1_w"], kp["val1_b"],
      kp["head2_w_adv"], kp["head2_w_val"], kp["head2_b"])
    return out[:batch, :num_actions]


# ----------------------------------------------------------------------------
# im2col conv layer (patch extraction is plain-JAX glue; GEMM is Pallas)
# ----------------------------------------------------------------------------
def _im2col(x_nhwc, kh, kw, stride):
    n, h, w, c = x_nhwc.shape
    oh = (h - kh) // stride + 1
    ow = (w - kw) // stride + 1
    patches = []
    for i in range(kh):
        for j in range(kw):
            patches.append(
                x_nhwc[:, i:i + stride * oh:stride, j:j + stride * ow:stride, :])
    cols = jnp.concatenate(patches, axis=-1)           # (N, OH, OW, KH*KW*C)
    return cols.reshape(n * oh * ow, kh * kw * c), (n, oh, ow)


def conv2d_relu(x_nhwc, w2d, b2, kh, kw, stride):
    cols, (n, oh, ow) = _im2col(x_nhwc, kh, kw, stride)
    cout = w2d.shape[1]
    out = matmul_bias_act(cols, w2d, b2, relu=True)    # (N*OH*OW, OC) bf16
    return out.reshape(n, oh, ow, cout)


# ----------------------------------------------------------------------------
# Parameters
# ----------------------------------------------------------------------------
def init_params(key, input_shape, num_actions):
    """PyTorch-equivalent parameters (bf16 weights, f32 biases).

    Conv weights stored HWIO (= torch (OC,C,KH,KW).transpose(2,3,1,0)); linear
    weights stored (in, out) (= torch Linear.weight.T), rows in NCHW-flatten
    order for the first linear layers.
    """
    c_in, h, w = input_shape
    h1, w1 = _conv_out(h, 8, 4), _conv_out(w, 8, 4)
    h2, w2 = _conv_out(h1, 4, 2), _conv_out(w1, 4, 2)
    h3, w3 = _conv_out(h2, 3, 1), _conv_out(w2, 3, 1)
    feat = 64 * h3 * w3

    ks = jax.random.split(key, 14)

    def w_init(k, shape, fan_in):
        return (jax.random.normal(k, shape, jnp.float32) * (fan_in ** -0.5)
                ).astype(jnp.bfloat16)

    def b_init(k, n, fan_in):
        lim = fan_in ** -0.5
        return jax.random.uniform(k, (n,), jnp.float32, -lim, lim)

    params = {
        "conv1_w": w_init(ks[0], (8, 8, c_in, 32), 8 * 8 * c_in),
        "conv1_b": b_init(ks[1], 32, 8 * 8 * c_in),
        "conv2_w": w_init(ks[2], (4, 4, 32, 64), 4 * 4 * 32),
        "conv2_b": b_init(ks[3], 64, 4 * 4 * 32),
        "conv3_w": w_init(ks[4], (3, 3, 64, 64), 3 * 3 * 64),
        "conv3_b": b_init(ks[5], 64, 3 * 3 * 64),
        "adv1_w": w_init(ks[6], (feat, 512), feat),
        "adv1_b": b_init(ks[7], 512, feat),
        "adv2_w": w_init(ks[8], (512, num_actions), 512),
        "adv2_b": b_init(ks[9], num_actions, 512),
        "val1_w": w_init(ks[10], (feat, 512), feat),
        "val1_b": b_init(ks[11], 512, feat),
        "val2_w": w_init(ks[12], (512, 1), 512),
        "val2_b": b_init(ks[13], 1, 512),
    }
    return params, (h3, w3, feat)


def prepare_kernel_params(p, input_shape, num_actions):
    """One-time conversion to kernel-ready tensors (all per-call prep hoisted here)."""
    c_in, h, w = input_shape
    h1, w1 = _conv_out(h, 8, 4), _conv_out(w, 8, 4)
    h2, w2 = _conv_out(h1, 4, 2), _conv_out(w1, 4, 2)
    h3, w3 = _conv_out(h2, 3, 1), _conv_out(w2, 3, 1)
    feat = 64 * h3 * w3
    a = num_actions
    p_lanes = max(128, _round_up(a + 1, 128))   # lane-dense padded head output width

    # Row permutation so NHWC-flattened features hit the NCHW-ordered weights:
    # perm[idx_nhwc(h,w,c)] = idx_nchw(c,h,w)
    nchw_idx = jnp.arange(feat).reshape(64, h3, w3)
    perm = jnp.transpose(nchw_idx, (1, 2, 0)).reshape(-1)

    def conv_w2d(w4):  # (KH,KW,C,OC) -> (KH*KW*C, OC), kh-major/kw/c row order
        kh, kw, ci, co = w4.shape
        return w4.reshape(kh * kw * ci, co).astype(jnp.bfloat16)

    w2a = jnp.zeros((512, p_lanes), jnp.bfloat16).at[:, :a].set(
        p["adv2_w"].astype(jnp.bfloat16))
    w2v = jnp.zeros((512, p_lanes), jnp.bfloat16).at[:, a:a + 1].set(
        p["val2_w"].astype(jnp.bfloat16))
    b2 = (jnp.zeros((1, p_lanes), jnp.float32)
          .at[0, :a].set(p["adv2_b"])
          .at[0, a].set(p["val2_b"][0]))

    return {
        "conv1_w2d": conv_w2d(p["conv1_w"]), "conv1_b2": p["conv1_b"].reshape(1, -1),
        "conv2_w2d": conv_w2d(p["conv2_w"]), "conv2_b2": p["conv2_b"].reshape(1, -1),
        "conv3_w2d": conv_w2d(p["conv3_w"]), "conv3_b2": p["conv3_b"].reshape(1, -1),
        "adv1_w": p["adv1_w"].astype(jnp.bfloat16)[perm, :],
        "adv1_b": p["adv1_b"].reshape(1, -1),
        "val1_w": p["val1_w"].astype(jnp.bfloat16)[perm, :],
        "val1_b": p["val1_b"].reshape(1, -1),
        "head2_w_adv": w2a, "head2_w_val": w2v, "head2_b": b2,
    }


# ----------------------------------------------------------------------------
# Forward
# ----------------------------------------------------------------------------
def async_ddqn_cnn_forward(kparams, x, *, num_actions):
    # x: (B, C, H, W) or (T, B, C, H, W) -- PyTorch NCHW convention.
    if x.ndim == 5:
        x = x.reshape(-1, x.shape[2], x.shape[3], x.shape[4])
    x = jnp.transpose(x, (0, 2, 3, 1)).astype(jnp.bfloat16)   # NCHW -> NHWC, bf16

    x = conv2d_relu(x, kparams["conv1_w2d"], kparams["conv1_b2"], 8, 8, 4)
    x = conv2d_relu(x, kparams["conv2_w2d"], kparams["conv2_b2"], 4, 4, 2)
    x = conv2d_relu(x, kparams["conv3_w2d"], kparams["conv3_b2"], 3, 3, 1)

    b = x.shape[0]
    feats = x.reshape(b, -1)                 # NHWC flatten (weights row-permuted to match)
    b_pad = _round_up(b, 8)
    if b_pad != b:
        feats = jnp.pad(feats, ((0, b_pad - b), (0, 0)))

    return dueling_head(feats, kparams, batch=b, num_actions=num_actions)


# ----------------------------------------------------------------------------
# Reference (pure JAX, f32, PyTorch NCHW flatten order) for a sanity check
# ----------------------------------------------------------------------------
def _reference_forward(params, x):
    if x.ndim == 5:
        x = x.reshape(-1, x.shape[2], x.shape[3], x.shape[4])
    x = jnp.transpose(x, (0, 2, 3, 1)).astype(jnp.float32)

    def conv(h, w, b, s):
        y = jax.lax.conv_general_dilated(
            h, w.astype(jnp.float32), window_strides=(s, s), padding="VALID",
            dimension_numbers=("NHWC", "HWIO", "NHWC"))
        return jax.nn.relu(y + b)

    h = conv(x, params["conv1_w"], params["conv1_b"], 4)
    h = conv(h, params["conv2_w"], params["conv2_b"], 2)
    h = conv(h, params["conv3_w"], params["conv3_b"], 1)
    b = h.shape[0]
    feats = jnp.transpose(h, (0, 3, 1, 2)).reshape(b, -1)     # NCHW flatten
    adv = jax.nn.relu(feats @ params["adv1_w"].astype(jnp.float32) + params["adv1_b"])
    adv = adv @ params["adv2_w"].astype(jnp.float32) + params["adv2_b"]
    val = jax.nn.relu(feats @ params["val1_w"].astype(jnp.float32) + params["val1_b"])
    val = val @ params["val2_w"].astype(jnp.float32) + params["val2_b"]
    return val + adv - jnp.mean(adv)


# ----------------------------------------------------------------------------
if __name__ == "__main__":
    input_shape = (4, 36, 36)   # (C, H, W); smallest spatial the conv stack allows
    num_actions = 6
    batch = 2

    key = jax.random.PRNGKey(0)
    pkey, xkey = jax.random.split(key)
    params, (h3, w3, feat) = init_params(pkey, input_shape, num_actions)
    kparams = prepare_kernel_params(params, input_shape, num_actions)

    x = jax.random.normal(xkey, (batch, *input_shape), jnp.float32).astype(jnp.bfloat16)

    fwd = jax.jit(functools.partial(async_ddqn_cnn_forward, num_actions=num_actions))
    out = jax.block_until_ready(fwd(kparams, x))
    ref = jax.block_until_ready(_reference_forward(params, x))

    assert out.shape == (batch, num_actions), out.shape
    max_err = float(jnp.max(jnp.abs(out - ref)))
    # bf16 operands + bf16 inter-layer activations (f32 accumulation): loose tolerance.
    assert jnp.allclose(out, ref, atol=5e-2, rtol=5e-2), f"mismatch: max err {max_err}"

    print("KERNEL_OK")
</pallas_src>

<mosaic_0001>
module attributes {stable_mosaic.version = 11 : i64} {
  func.func @_gemm_bias_act_kernel(%arg0: i32, %arg1: memref<128x256xbf16, #tpu.memory_space<vmem>>, %arg2: memref<256x32xbf16, #tpu.memory_space<vmem>>, %arg3: memref<1x32xf32, #tpu.memory_space<vmem>>, %arg4: memref<128x32xbf16, #tpu.memory_space<vmem>>) attributes {dimension_semantics = [#tpu.dimension_semantics<parallel>], iteration_bounds = array<i64: 1>, scalar_prefetch = 0 : i64, scratch_operands = 0 : i64, tpu.core_type = #tpu.core_type<tc>, window_params = [{transform_indices = @transform_0, window_bounds = array<i64: 128, 256>}, {pipeline_mode = #tpu.pipeline_mode<synchronous>, transform_indices = @transform_1, window_bounds = array<i64: 256, 32>}, {pipeline_mode = #tpu.pipeline_mode<synchronous>, transform_indices = @transform_2, window_bounds = array<i64: 1, 32>}, {transform_indices = @transform_3, window_bounds = array<i64: 128, 32>}]} {
    %c0 = arith.constant 0 : index
    %c0_0 = arith.constant 0 : index
    %0 = vector.load %arg1[%c0, %c0_0] : memref<128x256xbf16, #tpu.memory_space<vmem>>, vector<128x256xbf16>
    %c0_1 = arith.constant 0 : index
    %c0_2 = arith.constant 0 : index
    %1 = vector.load %arg2[%c0_1, %c0_2] : memref<256x32xbf16, #tpu.memory_space<vmem>>, vector<256x32xbf16>
    %cst = arith.constant dense<0.000000e+00> : vector<128x32xf32>
    %2 = tpu.matmul %0, %1, %cst {dimension_numbers = #tpu.dot_dimension_numbers<[1], [0], [0], [1], [0, 0, 1, 1], [], []>} : vector<128x256xbf16>, vector<256x32xbf16>, vector<128x32xf32> -> vector<128x32xf32>
    %c0_3 = arith.constant 0 : index
    %c0_4 = arith.constant 0 : index
    %3 = vector.load %arg3[%c0_3, %c0_4] : memref<1x32xf32, #tpu.memory_space<vmem>>, vector<1x32xf32>
    %4 = vector.broadcast %3 : vector<1x32xf32> to vector<128x32xf32>
    %5 = arith.addf %2, %4 : vector<128x32xf32>
    %cst_5 = arith.constant 0.000000e+00 : f32
    %6 = vector.broadcast %cst_5 : f32 to vector<128x32xf32>
    %7 = arith.maximumf %5, %6 : vector<128x32xf32>
    %8 = arith.truncf %7 : vector<128x32xf32> to vector<128x32xbf16>
    %c0_6 = arith.constant 0 : index
    %c0_7 = arith.constant 0 : index
    %9 = vector.load %arg4[%c0_6, %c0_7] : memref<128x32xbf16, #tpu.memory_space<vmem>>, vector<128x32xbf16>
    tpu.vector_store %arg4[%c0_6, %c0_7], %8 {strides = array<i32>} : memref<128x32xbf16, #tpu.memory_space<vmem>>, vector<128x32xbf16>,
    return
  }
  func.func @transform_0(%arg0: i32) -> (i32, i32) {
    %c0_i32 = arith.constant 0 : i32
    %c0_i32_0 = arith.constant 0 : i32
    return %arg0, %c0_i32 : i32, i32
  }
  func.func @transform_1(%arg0: i32) -> (i32, i32) {
    %c0_i32 = arith.constant 0 : i32
    %c0_i32_0 = arith.constant 0 : i32
    %c0_i32_1 = arith.constant 0 : i32
    return %c0_i32, %c0_i32_0 : i32, i32
  }
  func.func @transform_2(%arg0: i32) -> (i32, i32) {
    %c0_i32 = arith.constant 0 : i32
    %c0_i32_0 = arith.constant 0 : i32
    %c0_i32_1 = arith.constant 0 : i32
    return %c0_i32, %c0_i32_0 : i32, i32
  }
  func.func @transform_3(%arg0: i32) -> (i32, i32) {
    %c0_i32 = arith.constant 0 : i32
    %c0_i32_0 = arith.constant 0 : i32
    return %arg0, %c0_i32 : i32, i32
  }
}

module attributes {stable_mosaic.version = 11 : i64} {
  func.func @_gemm_bias_act_kernel(%arg0: i32, %arg1: memref<24x512xbf16, #tpu.memory_space<vmem>>, %arg2: memref<512x64xbf16, #tpu.memory_space<vmem>>, %arg3: memref<1x64xf32, #tpu.memory_space<vmem>>, %arg4: memref<24x64xbf16, #tpu.memory_space<vmem>>) attributes {dimension_semantics = [#tpu.dimension_semantics<parallel>], iteration_bounds = array<i64: 1>, scalar_prefetch = 0 : i64, scratch_operands = 0 : i64, tpu.core_type = #tpu.core_type<tc>, window_params = [{transform_indices = @transform_0, window_bounds = array<i64: 24, 512>}, {pipeline_mode = #tpu.pipeline_mode<synchronous>, transform_indices = @transform_1, window_bounds = array<i64: 512, 64>}, {pipeline_mode = #tpu.pipeline_mode<synchronous>, transform_indices = @transform_2, window_bounds = array<i64: 1, 64>}, {transform_indices = @transform_3, window_bounds = array<i64: 24, 64>}]} {
    %c0 = arith.constant 0 : index
    %c0_0 = arith.constant 0 : index
    %0 = vector.load %arg1[%c0, %c0_0] : memref<24x512xbf16, #tpu.memory_space<vmem>>, vector<24x512xbf16>
    %c0_1 = arith.constant 0 : index
    %c0_2 = arith.constant 0 : index
    %1 = vector.load %arg2[%c0_1, %c0_2] : memref<512x64xbf16, #tpu.memory_space<vmem>>, vector<512x64xbf16>
    %cst = arith.constant dense<0.000000e+00> : vector<24x64xf32>
    %2 = tpu.matmul %0, %1, %cst {dimension_numbers = #tpu.dot_dimension_numbers<[1], [0], [0], [1], [0, 0, 1, 1], [], []>} : vector<24x512xbf16>, vector<512x64xbf16>, vector<24x64xf32> -> vector<24x64xf32>
    %c0_3 = arith.constant 0 : index
    %c0_4 = arith.constant 0 : index
    %3 = vector.load %arg3[%c0_3, %c0_4] : memref<1x64xf32, #tpu.memory_space<vmem>>, vector<1x64xf32>
    %4 = vector.broadcast %3 : vector<1x64xf32> to vector<24x64xf32>
    %5 = arith.addf %2, %4 : vector<24x64xf32>
    %cst_5 = arith.constant 0.000000e+00 : f32
    %6 = vector.broadcast %cst_5 : f32 to vector<24x64xf32>
    %7 = arith.maximumf %5, %6 : vector<24x64xf32>
    %8 = arith.truncf %7 : vector<24x64xf32> to vector<24x64xbf16>
    %c0_6 = arith.constant 0 : index
    %c0_7 = arith.constant 0 : index
    %9 = vector.load %arg4[%c0_6, %c0_7] : memref<24x64xbf16, #tpu.memory_space<vmem>>, vector<24x64xbf16>
    tpu.vector_store %arg4[%c0_6, %c0_7], %8 {strides = array<i32>} : memref<24x64xbf16, #tpu.memory_space<vmem>>, vector<24x64xbf16>,
    return
  }
  func.func @transform_0(%arg0: i32) -> (i32, i32) {
    %c0_i32 = arith.constant 0 : i32
    %c0_i32_0 = arith.constant 0 : i32
    return %arg0, %c0_i32 : i32, i32
  }
  func.func @transform_1(%arg0: i32) -> (i32, i32) {
    %c0_i32 = arith.constant 0 : i32
    %c0_i32_0 = arith.constant 0 : i32
    %c0_i32_1 = arith.constant 0 : i32
    return %c0_i32, %c0_i32_0 : i32, i32
  }
  func.func @transform_2(%arg0: i32) -> (i32, i32) {
    %c0_i32 = arith.constant 0 : i32
    %c0_i32_0 = arith.constant 0 : i32
    %c0_i32_1 = arith.constant 0 : i32
    return %c0_i32, %c0_i32_0 : i32, i32
  }
  func.func @transform_3(%arg0: i32) -> (i32, i32) {
    %c0_i32 = arith.constant 0 : i32
    %c0_i32_0 = arith.constant 0 : i32
    return %arg0, %c0_i32 : i32, i32
  }
}

module attributes {stable_mosaic.version = 11 : i64} {
  func.func @_gemm_bias_act_kernel(%arg0: i32, %arg1: memref<8x576xbf16, #tpu.memory_space<vmem>>, %arg2: memref<576x64xbf16, #tpu.memory_space<vmem>>, %arg3: memref<1x64xf32, #tpu.memory_space<vmem>>, %arg4: memref<8x64xbf16, #tpu.memory_space<vmem>>) attributes {dimension_semantics = [#tpu.dimension_semantics<parallel>], iteration_bounds = array<i64: 1>, scalar_prefetch = 0 : i64, scratch_operands = 0 : i64, tpu.core_type = #tpu.core_type<tc>, window_params = [{transform_indices = @transform_0, window_bounds = array<i64: 8, 576>}, {pipeline_mode = #tpu.pipeline_mode<synchronous>, transform_indices = @transform_1, window_bounds = array<i64: 576, 64>}, {pipeline_mode = #tpu.pipeline_mode<synchronous>, transform_indices = @transform_2, window_bounds = array<i64: 1, 64>}, {transform_indices = @transform_3, window_bounds = array<i64: 8, 64>}]} {
    %c0 = arith.constant 0 : index
    %c0_0 = arith.constant 0 : index
    %0 = vector.load %arg1[%c0, %c0_0] : memref<8x576xbf16, #tpu.memory_space<vmem>>, vector<8x576xbf16>
    %c0_1 = arith.constant 0 : index
    %c0_2 = arith.constant 0 : index
    %1 = vector.load %arg2[%c0_1, %c0_2] : memref<576x64xbf16, #tpu.memory_space<vmem>>, vector<576x64xbf16>
    %cst = arith.constant dense<0.000000e+00> : vector<8x64xf32>
    %2 = tpu.matmul %0, %1, %cst {dimension_numbers = #tpu.dot_dimension_numbers<[1], [0], [0], [1], [0, 0, 1, 1], [], []>} : vector<8x576xbf16>, vector<576x64xbf16>, vector<8x64xf32> -> vector<8x64xf32>
    %c0_3 = arith.constant 0 : index
    %c0_4 = arith.constant 0 : index
    %3 = vector.load %arg3[%c0_3, %c0_4] : memref<1x64xf32, #tpu.memory_space<vmem>>, vector<1x64xf32>
    %4 = vector.broadcast %3 : vector<1x64xf32> to vector<8x64xf32>
    %5 = arith.addf %2, %4 : vector<8x64xf32>
    %cst_5 = arith.constant 0.000000e+00 : f32
    %6 = vector.broadcast %cst_5 : f32 to vector<8x64xf32>
    %7 = arith.maximumf %5, %6 : vector<8x64xf32>
    %8 = arith.truncf %7 : vector<8x64xf32> to vector<8x64xbf16>
    %c0_6 = arith.constant 0 : index
    %c0_7 = arith.constant 0 : index
    %9 = vector.load %arg4[%c0_6, %c0_7] : memref<8x64xbf16, #tpu.memory_space<vmem>>, vector<8x64xbf16>
    tpu.vector_store %arg4[%c0_6, %c0_7], %8 {strides = array<i32>} : memref<8x64xbf16, #tpu.memory_space<vmem>>, vector<8x64xbf16>,
    return
  }
  func.func @transform_0(%arg0: i32) -> (i32, i32) {
    %c0_i32 = arith.constant 0 : i32
    %c0_i32_0 = arith.constant 0 : i32
    return %arg0, %c0_i32 : i32, i32
  }
  func.func @transform_1(%arg0: i32) -> (i32, i32) {
    %c0_i32 = arith.constant 0 : i32
    %c0_i32_0 = arith.constant 0 : i32
    %c0_i32_1 = arith.constant 0 : i32
    return %c0_i32, %c0_i32_0 : i32, i32
  }
  func.func @transform_2(%arg0: i32) -> (i32, i32) {
    %c0_i32 = arith.constant 0 : i32
    %c0_i32_0 = arith.constant 0 : i32
    %c0_i32_1 = arith.constant 0 : i32
    return %c0_i32, %c0_i32_0 : i32, i32
  }
  func.func @transform_3(%arg0: i32) -> (i32, i32) {
    %c0_i32 = arith.constant 0 : i32
    %c0_i32_0 = arith.constant 0 : i32
    return %arg0, %c0_i32 : i32, i32
  }
}

module attributes {stable_mosaic.version = 11 : i64} {
  func.func @_head_kernel(%arg0: memref<8x64xbf16, #tpu.memory_space<vmem>>, %arg1: memref<64x512xbf16, #tpu.memory_space<vmem>>, %arg2: memref<1x512xf32, #tpu.memory_space<vmem>>, %arg3: memref<64x512xbf16, #tpu.memory_space<vmem>>, %arg4: memref<1x512xf32, #tpu.memory_space<vmem>>, %arg5: memref<512x128xbf16, #tpu.memory_space<vmem>>, %arg6: memref<512x128xbf16, #tpu.memory_space<vmem>>, %arg7: memref<1x128xf32, #tpu.memory_space<vmem>>, %arg8: memref<8x128xf32, #tpu.memory_space<vmem>>) attributes {dimension_semantics = [], scalar_prefetch = 0 : i64, scratch_operands = 0 : i64, tpu.core_type = #tpu.core_type<tc>} {
    %c0 = arith.constant 0 : index
    %c0_0 = arith.constant 0 : index
    %0 = vector.load %arg0[%c0, %c0_0] : memref<8x64xbf16, #tpu.memory_space<vmem>>, vector<8x64xbf16>
    %c0_1 = arith.constant 0 : index
    %c0_2 = arith.constant 0 : index
    %1 = vector.load %arg1[%c0_1, %c0_2] : memref<64x512xbf16, #tpu.memory_space<vmem>>, vector<64x512xbf16>
    %cst = arith.constant dense<0.000000e+00> : vector<8x512xf32>
    %2 = tpu.matmul %0, %1, %cst {dimension_numbers = #tpu.dot_dimension_numbers<[1], [0], [0], [1], [0, 0, 1, 1], [], []>} : vector<8x64xbf16>, vector<64x512xbf16>, vector<8x512xf32> -> vector<8x512xf32>
    %c0_3 = arith.constant 0 : index
    %c0_4 = arith.constant 0 : index
    %3 = vector.load %arg2[%c0_3, %c0_4] : memref<1x512xf32, #tpu.memory_space<vmem>>, vector<1x512xf32>
    %4 = vector.broadcast %3 : vector<1x512xf32> to vector<8x512xf32>
    %5 = arith.addf %2, %4 : vector<8x512xf32>
    %cst_5 = arith.constant 0.000000e+00 : f32
    %6 = vector.broadcast %cst_5 : f32 to vector<8x512xf32>
    %7 = arith.maximumf %5, %6 : vector<8x512xf32>
    %8 = arith.truncf %7 : vector<8x512xf32> to vector<8x512xbf16>
    %c0_6 = arith.constant 0 : index
    %c0_7 = arith.constant 0 : index
    %9 = vector.load %arg3[%c0_6, %c0_7] : memref<64x512xbf16, #tpu.memory_space<vmem>>, vector<64x512xbf16>
    %cst_8 = arith.constant dense<0.000000e+00> : vector<8x512xf32>
    %10 = tpu.matmul %0, %9, %cst_8 {dimension_numbers = #tpu.dot_dimension_numbers<[1], [0], [0], [1], [0, 0, 1, 1], [], []>} : vector<8x64xbf16>, vector<64x512xbf16>, vector<8x512xf32> -> vector<8x512xf32>
    %c0_9 = arith.constant 0 : index
    %c0_10 = arith.constant 0 : index
    %11 = vector.load %arg4[%c0_9, %c0_10] : memref<1x512xf32, #tpu.memory_space<vmem>>, vector<1x512xf32>
    %12 = vector.broadcast %11 : vector<1x512xf32> to vector<8x512xf32>
    %13 = arith.addf %10, %12 : vector<8x512xf32>
    %cst_11 = arith.constant 0.000000e+00 : f32
    %14 = vector.broadcast %cst_11 : f32 to vector<8x512xf32>
    %15 = arith.maximumf %13, %14 : vector<8x512xf32>
    %16 = arith.truncf %15 : vector<8x512xf32> to vector<8x512xbf16>
    %c0_12 = arith.constant 0 : index
    %c0_13 = arith.constant 0 : index
    %17 = vector.load %arg5[%c0_12, %c0_13] : memref<512x128xbf16, #tpu.memory_space<vmem>>, vector<512x128xbf16>
    %cst_14 = arith.constant dense<0.000000e+00> : vector<8x128xf32>
    %18 = tpu.matmul %8, %17, %cst_14 {dimension_numbers = #tpu.dot_dimension_numbers<[1], [0], [0], [1], [0, 0, 1, 1], [], []>} : vector<8x512xbf16>, vector<512x128xbf16>, vector<8x128xf32> -> vector<8x128xf32>
    %c0_15 = arith.constant 0 : index
    %c0_16 = arith.constant 0 : index
    %19 = vector.load %arg6[%c0_15, %c0_16] : memref<512x128xbf16, #tpu.memory_space<vmem>>, vector<512x128xbf16>
    %cst_17 = arith.constant dense<0.000000e+00> : vector<8x128xf32>
    %20 = tpu.matmul %16, %19, %cst_17 {dimension_numbers = #tpu.dot_dimension_numbers<[1], [0], [0], [1], [0, 0, 1, 1], [], []>} : vector<8x512xbf16>, vector<512x128xbf16>, vector<8x128xf32> -> vector<8x128xf32>
    %21 = arith.addf %18, %20 : vector<8x128xf32>
    %c0_18 = arith.constant 0 : index
    %c0_19 = arith.constant 0 : index
    %22 = vector.load %arg7[%c0_18, %c0_19] : memref<1x128xf32, #tpu.memory_space<vmem>>, vector<1x128xf32>
    %23 = vector.broadcast %22 : vector<1x128xf32> to vector<8x128xf32>
    %24 = arith.addf %21, %23 : vector<8x128xf32>
    %25 = tpu.iota {dimensions = array<i32: 0>} : vector<8x128xi32>
    %26 = tpu.iota {dimensions = array<i32: 1>} : vector<8x128xi32>
    %c2_i32 = arith.constant 2 : i32
    %27 = vector.broadcast %c2_i32 : i32 to vector<8x128xi32>
    %28 = arith.cmpi slt, %25, %27 : vector<8x128xi32>
    %c6_i32 = arith.constant 6 : i32
    %29 = vector.broadcast %c6_i32 : i32 to vector<8x128xi32>
    %30 = arith.cmpi slt, %26, %29 : vector<8x128xi32>
    %31 = arith.andi %28, %30 : vector<8x128xi1>
    %cst_20 = arith.constant 0.000000e+00 : f32
    %32 = vector.broadcast %cst_20 : f32 to vector<8x128xf32>
    %33 = arith.select %31, %24, %32 : vector<8x128xi1>, vector<8x128xf32>
    %34 = vector.shape_cast %33 : vector<8x128xf32> to vector<1x8x128xf32>
    %cst_21 = arith.constant dense<0.000000e+00> : vector<1xf32>
    %35 = vector.multi_reduction <add>, %34, %cst_21 [1, 2] : vector<1x8x128xf32> to vector<1xf32>
    %36 = vector.shape_cast %35 : vector<1xf32> to vector<1x1x1xf32>
    %37 = vector.extract %36[0, 0, 0] : f32 from vector<1x1x1xf32>
    %cst_22 = arith.constant 0.0833333358 : f32
    %38 = arith.mulf %37, %cst_22 : f32
    %39 = vector.extract_strided_slice %24 {offsets = [0, 6], sizes = [8, 1], strides = [1, 1]} : vector<8x128xf32> to vector<8x1xf32>
    %40 = vector.broadcast %39 : vector<8x1xf32> to vector<8x128xf32>
    %41 = arith.addf %40, %24 : vector<8x128xf32>
    %42 = vector.broadcast %38 : f32 to vector<8x128xf32>
    %43 = arith.subf %41, %42 : vector<8x128xf32>
    %c0_23 = arith.constant 0 : index
    %c0_24 = arith.constant 0 : index
    %44 = vector.load %arg8[%c0_23, %c0_24] : memref<8x128xf32, #tpu.memory_space<vmem>>, vector<8x128xf32>
    tpu.vector_store %arg8[%c0_23, %c0_24], %43 {strides = array<i32>} : memref<8x128xf32, #tpu.memory_space<vmem>>, vector<8x128xf32>,
    return
  }
}

</mosaic_0001>

<bundles_post_ra>
// kernel: async_ddqn_cnn_forward.4
= control target key start
LH: loop header
LB: loop body
LE: loop exit
PB: predicated region body
PF: predicated region fallthrough
CT: control target
= control target key end

     0   :  { %vm423_vm0 = vcmask 257024   ;;  %s830_s1 = inlined_call_operand.vmem [shape: bf16[256,32], index: 1, kind: input, shape index: {}]   ;;  %s831_s0 = inlined_call_operand.vmem [shape: bf16[128,256], index: 0, kind: input, shape index: {}]   ;;  %s832_s2 = inlined_call_operand.vmem [shape: f32[1,32], index: 2, kind: input, shape index: {}]   ;;  %s833_s3 = inlined_call_operand.vmem [shape: bf16[128,32], index: 3, kind: output, shape index: {}]  }
   0x1   :  { %v589_v0 = vld [vmem:[%s830_s1 + $0x40] sm:$0xff]   ;;  %v591_v2 = vld [vmem:[%s830_s1 + $0x48] sm:$0xff]   ;;  %v593_v4 = vld [vmem:[%s830_s1 + $0x50] sm:$0xff]  }
   0x2   :  { %v590_v1 = vld [vmem:[%s830_s1] sm:$0xff]   ;;  %509 = vmatprep.subr.bf16.mxu0 %v589_v0  ;;  %573 = vmatprep.subr.bf16.mxu1 %v589_v0  ;;  %v592_v3 = vld [vmem:[%s830_s1 + $0x8] sm:$0xff]   ;;  %v594_v5 = vld [vmem:[%s830_s1 + $0x10] sm:$0xff]  }
   0x3   :  { %510 = vmatpush3.bf16.msra.mxu0 %v590_v1  ;;  %581 = vmatpush3.bf16.msra.mxu1 %v590_v1  ;;  %v595_v6 = vld [vmem:[%s830_s1 + $0x58] sm:$0xff]   ;;  %v597_v8 = vld [vmem:[%s830_s1 + $0x60] sm:$0xff]   ;;  %v599_v10 = vld [vmem:[%s830_s1 + $0x68] sm:$0xff]  }
   0x4   :  { %511 = vmatprep.subr.bf16.mxu0 %v591_v2  ;;  %574 = vmatprep.subr.bf16.mxu1 %v591_v2  ;;  %v596_v7 = vld [vmem:[%s830_s1 + $0x18] sm:$0xff]   ;;  %v598_v9 = vld [vmem:[%s830_s1 + $0x20] sm:$0xff]   ;;  %v600_v13 = vld [vmem:[%s830_s1 + $0x28] sm:$0xff]  }
   0x5   :  { %v607_v11 = vld [vmem:[%s831_s0 + $0x4] ss:$8 sps:$4 sm:$0xff]   ;;  %v601_v14 = vld [vmem:[%s830_s1 + $0x70] sm:$0xff]   ;;  %v603_v16 = vld [vmem:[%s830_s1 + $0x78] sm:$0xff]  }
   0x6   :  { %v610_v12 = vld [vmem:[%s831_s0 + $0x44] ss:$8 sps:$4 sm:$0xff]   ;;  %278 = vmatprep.mubr.bf16.mxu0 %v607_v11  ;;  %v602_v15 = vld [vmem:[%s830_s1 + $0x30] sm:$0xff]   ;;  %v604_v17 = vld [vmem:[%s830_s1 + $0x38] sm:$0xff]  }
   0x7   :  { %512 = vmatpush3.bf16.msra.mxu0 %v592_v3  ;;  %582 = vmatpush3.bf16.msra.mxu1 %v592_v3  ;;  %v605_v18 = vld [vmem:[%s831_s0] ss:$8 sps:$4 sm:$0xff]   ;;  %v611_v20 = vld [vmem:[%s831_s0 + $0x14] ss:$8 sps:$4 sm:$0xff]   ;;  %v615_v22 = vld [vmem:[%s831_s0 + $0x10] ss:$8 sps:$4 sm:$0xff]  }
   0x8   :  { %513 = vmatprep.subr.bf16.mxu0 %v593_v4  ;;  %575 = vmatprep.subr.bf16.mxu1 %v593_v4  ;;  %v608_v19 = vld [vmem:[%s831_s0 + $0x40] ss:$8 sps:$4 sm:$0xff]   ;;  %v613_v21 = vld [vmem:[%s831_s0 + $0x54] ss:$8 sps:$4 sm:$0xff]   ;;  %v616_v23 = vld [vmem:[%s831_s0 + $0x50] ss:$8 sps:$4 sm:$0xff]  }
   0x9   :  { %310 = vmatprep.mubr.bf16.mxu1 %v610_v12  ;;  %v617_v24 = vld [vmem:[%s831_s0 + $0x24] ss:$8 sps:$4 sm:$0xff]   ;;  %v621_v26 = vld [vmem:[%s831_s0 + $0x20] ss:$8 sps:$4 sm:$0xff]   ;;  %v623_v28 = vld [vmem:[%s831_s0 + $0x34] ss:$8 sps:$4 sm:$0xff]  }
   0xa   :  { %v619_v25 = vld [vmem:[%s831_s0 + $0x64] ss:$8 sps:$4 sm:$0xff]   ;;  %v622_v27 = vld [vmem:[%s831_s0 + $0x60] ss:$8 sps:$4 sm:$0xff]   ;;  %v625_v29 = vld [vmem:[%s831_s0 + $0x74] ss:$8 sps:$4 sm:$0xff]  }
   0xb   :  { %514 = vmatpush3.bf16.msra.mxu0 %v594_v5  ;;  %583 = vmatpush3.bf16.msra.mxu1 %v594_v5  ;;  %v627_v30 = vld [vmem:[%s831_s0 + $0x30] ss:$8 sps:$4 sm:$0xff]   ;;  %v748_v34 = vld [vmem:[%s832_s2] ss:$0 sm:$0xff] }
   0xc   :  { %515 = vmatprep.subr.bf16.mxu0 %v595_v6  ;;  %576 = vmatprep.subr.bf16.mxu1 %v595_v6  ;;  %v628_v31 = vld [vmem:[%s831_s0 + $0x70] ss:$8 sps:$4 sm:$0xff]  }
   0xf   :  { %516 = vmatpush3.bf16.msra.mxu0 %v596_v7  ;;  %584 = vmatpush3.bf16.msra.mxu1 %v596_v7 }
  0x10   :  { %517 = vmatprep.subr.bf16.mxu0 %v597_v8  ;;  %577 = vmatprep.subr.bf16.mxu1 %v597_v8 }
  0x13   :  { %518 = vmatpush3.bf16.msra.mxu0 %v598_v9  ;;  %585 = vmatpush3.bf16.msra.mxu1 %v598_v9 }
  0x14   :  { %519 = vmatprep.subr.bf16.mxu0 %v599_v10  ;;  %578 = vmatprep.subr.bf16.mxu1 %v599_v10 }
  0x17   :  { %520 = vmatpush3.bf16.msra.mxu0 %v600_v13  ;;  %586 = vmatpush3.bf16.msra.mxu1 %v600_v13 }
  0x18   :  { %521 = vmatprep.subr.bf16.mxu0 %v601_v14  ;;  %579 = vmatprep.subr.bf16.mxu1 %v601_v14 }
  0x1b   :  { %522 = vmatpush3.bf16.msra.mxu0 %v602_v15  ;;  %587 = vmatpush3.bf16.msra.mxu1 %v602_v15 }
  0x1c   :  { %523 = vmatprep.subr.bf16.mxu0 %v603_v16  ;;  %580 = vmatprep.subr.bf16.mxu1 %v603_v16 }
  0x1f   :  { %524 = vmatpush3.bf16.msra.mxu0 %v604_v17  ;;  %588 = vmatpush3.bf16.msra.mxu1 %v604_v17 }
  0x22   :  { %279 = vmatmul.mubr.bf16.vlgmr.msra.gmra.mrb[0].mxu0 %v605_v18  ;;  %311 = vmatmul.mubr.bf16.vlgmr.msra.gmra.mrb[0].mxu1 %v608_v19 }
  0x23   :  { %286 = vmatprep.mubr.bf16.mxu0 %v611_v20  ;;  %318 = vmatprep.mubr.bf16.mxu1 %v613_v21 }
  0x2a   :  { %287 = vmatmul.mubr.bf16.gmra.mrb[4].mxu0 %v615_v22  ;;  %319 = vmatmul.mubr.bf16.gmra.mrb[4].mxu1 %v616_v23 }
  0x2b   :  { %294 = vmatprep.mubr.bf16.mxu0 %v617_v24  ;;  %326 = vmatprep.mubr.bf16.mxu1 %v619_v25 }
  0x32   :  { %295 = vmatmul.mubr.bf16.gmra.mrb[8].mxu0 %v621_v26  ;;  %327 = vmatmul.mubr.bf16.gmra.mrb[8].mxu1 %v622_v27 }
  0x33   :  { %302 = vmatprep.mubr.bf16.mxu0 %v623_v28  ;;  %334 = vmatprep.mubr.bf16.mxu1 %v625_v29 }
  0x3a   :  { %303 = vmatmul.mubr.bf16.gmra.mrb[12].mxu0 %v627_v30  ;;  %335 = vmatmul.mubr.bf16.gmra.mrb[12].mxu1 %v628_v31 }
  0xf5   :  { %v525_v32 = vpop.f32.mrb[0].mxu0  ;;  %v549_v33 = vpop.f32.mrb[0].mxu1 }
  0xf6   :  { %v526_v35 = vpop.f32.mrb[1].mxu0  ;;  %v550_v36 = vpop.f32.mrb[1].mxu1 }
  0xf7   :  { %v527_v37 = vadd.f32 %v526_v35, %v525_v32  ;;  %v551_v38 = vadd.f32 %v550_v36, %v549_v33  ;;  %v528_v39 = vpop.f32.mrb[2].mxu0  ;;  %v552_v40 = vpop.f32.mrb[2].mxu1 }
  0xf8   :  { %v529_v41 = vpop.f32.mrb[3].mxu0  ;;  %v553_v42 = vpop.f32.mrb[3].mxu1 }
  0xf9   :  { %v281_v43 = vadd.f32 %v527_v37, %v748_v34  ;;  %v313_v44 = vadd.f32 %v551_v38, %v748_v34  ;;  %v530_v45 = vadd.f32 %v529_v41, %v528_v39  ;;  %v554_v46 = vadd.f32 %v553_v42, %v552_v40 }
  0xfb   :  { %v343_v47 = vmax.f32 %v281_v43, 0.0  ;;  %v351_v48 = vmax.f32 %v313_v44, 0.0  ;;  %v284_v49 = vadd.f32 %v530_v45, %v748_v34  ;;  %v316_v50 = vadd.f32 %v554_v46, %v748_v34 }
  0xfd   :  { %v493_v51 = vpack.c.bf16 %v343_v47, %v343_v47  ;;  %v501_v52 = vpack.c.bf16 %v351_v48, %v351_v48  ;;  %v344_v53 = vmax.f32 %v284_v49, 0.0  ;;  %v352_v54 = vmax.f32 %v316_v50, 0.0  ;;  %v531_v55 = vpop.f32.mrb[4].mxu0  ;;  %v555_v56 = vpop.f32.mrb[4].mxu1 }
  0xfe   :  { %v532_v57 = vpop.f32.mrb[5].mxu0  ;;  %v556_v58 = vpop.f32.mrb[5].mxu1 }
  0xff   :  { %424 = vst.msk [vmem:[%s833_s3] sm:$0xf] %vm423_vm0, %v493_v51  ;;  %432 = vst.msk [vmem:[%s833_s3 + $0x20] sm:$0xf] %vm423_vm0, %v501_v52  ;;  %v494_v59 = vpack.c.bf16 %v344_v53, %v344_v53  ;;  %v502_v60 = vpack.c.bf16 %v352_v54, %v352_v54  ;;  %v533_v61 = vadd.f32 %v532_v57, %v531_v55  ;;  %v534_v63 = vpop.f32.mrb[6].mxu0  ;;  %v558_v0 = vpop.f32.mrb[6].mxu1 }
 0x100   :  { %v557_v62 = vadd.f32 %v556_v58, %v555_v56  ;;  %v535_v1 = vpop.f32.mrb[7].mxu0  ;;  %v559_v2 = vpop.f32.mrb[7].mxu1 }
 0x101   :  { %425 = vst.msk [vmem:[%s833_s3 + $0x4] sm:$0xf] %vm423_vm0, %v494_v59  ;;  %433 = vst.msk [vmem:[%s833_s3 + $0x24] sm:$0xf] %vm423_vm0, %v502_v60  ;;  %v289_v3 = vadd.f32 %v533_v61, %v748_v34  ;;  %v536_v5 = vadd.f32 %v535_v1, %v534_v63  ;;  %v560_v6 = vadd.f32 %v559_v2, %v558_v0 }
 0x102   :  { %v321_v4 = vadd.f32 %v557_v62, %v748_v34 }
 0x103   :  { %v345_v7 = vmax.f32 %v289_v3, 0.0  ;;  %v292_v9 = vadd.f32 %v536_v5, %v748_v34  ;;  %v324_v10 = vadd.f32 %v560_v6, %v748_v34 }
 0x104   :  { %v353_v8 = vmax.f32 %v321_v4, 0.0 }
 0x105   :  { %v495_v11 = vpack.c.bf16 %v345_v7, %v345_v7  ;;  %v346_v13 = vmax.f32 %v292_v9, 0.0  ;;  %v354_v14 = vmax.f32 %v324_v10, 0.0  ;;  %v537_v15 = vpop.f32.mrb[8].mxu0  ;;  %v561_v16 = vpop.f32.mrb[8].mxu1 }
 0x106   :  { %v503_v12 = vpack.c.bf16 %v353_v8, %v353_v8  ;;  %v538_v17 = vpop.f32.mrb[9].mxu0  ;;  %v562_v18 = vpop.f32.mrb[9].mxu1 }
 0x107   :  { %426 = vst.msk [vmem:[%s833_s3 + $0x8] sm:$0xf] %vm423_vm0, %v495_v11  ;;  %v496_v19 = vpack.c.bf16 %v346_v13, %v346_v13  ;;  %v504_v20 = vpack.c.bf16 %v354_v14, %v354_v14  ;;  %v539_v21 = vadd.f32 %v538_v17, %v537_v15  ;;  %v563_v22 = vadd.f32 %v562_v18, %v561_v16  ;;  %v540_v23 = vpop.f32.mrb[10].mxu0  ;;  %v564_v24 = vpop.f32.mrb[10].mxu1 }
 0x108   :  { %434 = vst.msk [vmem:[%s833_s3 + $0x28] sm:$0xf] %vm423_vm0, %v503_v12  ;;  %v541_v25 = vpop.f32.mrb[11].mxu0  ;;  %v565_v26 = vpop.f32.mrb[11].mxu1 }
 0x109   :  { %427 = vst.msk [vmem:[%s833_s3 + $0xc] sm:$0xf] %vm423_vm0, %v496_v19  ;;  %435 = vst.msk [vmem:[%s833_s3 + $0x2c] sm:$0xf] %vm423_vm0, %v504_v20  ;;  %v297_v27 = vadd.f32 %v539_v21, %v748_v34  ;;  %v329_v28 = vadd.f32 %v563_v22, %v748_v34  ;;  %v542_v29 = vadd.f32 %v541_v25, %v540_v23 }
 0x10a   :  { %v566_v30 = vadd.f32 %v565_v26, %v564_v24 }
 0x10b   :  { %v347_v31 = vmax.f32 %v297_v27, 0.0  ;;  %v355_v32 = vmax.f32 %v329_v28, 0.0  ;;  %v300_v33 = vadd.f32 %v542_v29, %v748_v34 }
 0x10c   :  { %v332_v35 = vadd.f32 %v566_v30, %v748_v34 }
 0x10d   :  { %v497_v36 = vpack.c.bf16 %v347_v31, %v347_v31  ;;  %v505_v37 = vpack.c.bf16 %v355_v32, %v355_v32  ;;  %v348_v38 = vmax.f32 %v300_v33, 0.0  ;;  %v543_v40 = vpop.f32.mrb[12].mxu0  ;;  %v567_v41 = vpop.f32.mrb[12].mxu1 }
 0x10e   :  { %v356_v39 = vmax.f32 %v332_v35, 0.0  ;;  %v544_v42 = vpop.f32.mrb[13].mxu0  ;;  %v568_v43 = vpop.f32.mrb[13].mxu1 }
 0x10f   :  { %428 = vst.msk [vmem:[%s833_s3 + $0x10] sm:$0xf] %vm423_vm0, %v497_v36  ;;  %436 = vst.msk [vmem:[%s833_s3 + $0x30] sm:$0xf] %vm423_vm0, %v505_v37  ;;  %v498_v44 = vpack.c.bf16 %v348_v38, %v348_v38  ;;  %v545_v46 = vadd.f32 %v544_v42, %v543_v40  ;;  %v569_v47 = vadd.f32 %v568_v43, %v567_v41  ;;  %v546_v48 = vpop.f32.mrb[14].mxu0  ;;  %v570_v49 = vpop.f32.mrb[14].mxu1 }
 0x110   :  { %v506_v45 = vpack.c.bf16 %v356_v39, %v356_v39  ;;  %v547_v50 = vpop.f32.mrb[15].mxu0  ;;  %v571_v51 = vpop.f32.mrb[15].mxu1 }
 0x111   :  { %429 = vst.msk [vmem:[%s833_s3 + $0x14] sm:$0xf] %vm423_vm0, %v498_v44  ;;  %v305_v52 = vadd.f32 %v545_v46, %v748_v34  ;;  %v337_v53 = vadd.f32 %v569_v47, %v748_v34  ;;  %v548_v54 = vadd.f32 %v547_v50, %v546_v48  ;;  %v572_v55 = vadd.f32 %v571_v51, %v570_v49 }
 0x112   :  { %437 = vst.msk [vmem:[%s833_s3 + $0x34] sm:$0xf] %vm423_vm0, %v506_v45 }
 0x113   :  { %v349_v56 = vmax.f32 %v305_v52, 0.0  ;;  %v357_v57 = vmax.f32 %v337_v53, 0.0  ;;  %v308_v58 = vadd.f32 %v548_v54, %v748_v34  ;;  %v340_v59 = vadd.f32 %v572_v55, %v748_v34 }
 0x115   :  { %v499_v60 = vpack.c.bf16 %v349_v56, %v349_v56  ;;  %v507_v61 = vpack.c.bf16 %v357_v57, %v357_v57  ;;  %v350_v62 = vmax.f32 %v308_v58, 0.0  ;;  %v358_v63 = vmax.f32 %v340_v59, 0.0 }
 0x117   :  { %430 = vst.msk [vmem:[%s833_s3 + $0x18] sm:$0xf] %vm423_vm0, %v499_v60  ;;  %438 = vst.msk [vmem:[%s833_s3 + $0x38] sm:$0xf] %vm423_vm0, %v507_v61  ;;  %v500_v0 = vpack.c.bf16 %v350_v62, %v350_v62  ;;  %v508_v1 = vpack.c.bf16 %v358_v63, %v358_v63 }
 0x119   :  { %431 = vst.msk [vmem:[%s833_s3 + $0x1c] sm:$0xf] %vm423_vm0, %v500_v0  ;;  %439 = vst.msk [vmem:[%s833_s3 + $0x3c] sm:$0xf] %vm423_vm0, %v508_v1 }

// kernel: async_ddqn_cnn_forward.5
= control target key start
LH: loop header
LB: loop body
LE: loop exit
PB: predicated region body
PF: predicated region fallthrough
CT: control target
= control target key end

     0   :  { %vm430_vm0 = vcmask 519168   ;;  %s732_s1 = inlined_call_operand.vmem [shape: bf16[512,64], index: 1, kind: input, shape index: {}]   ;;  %s733_s0 = inlined_call_operand.vmem [shape: bf16[24,512], index: 0, kind: input, shape index: {}]   ;;  %s734_s2 = inlined_call_operand.vmem [shape: f32[1,64], index: 2, kind: input, shape index: {}]   ;;  %s735_s3 = inlined_call_operand.vmem [shape: bf16[24,64], index: 3, kind: output, shape index: {}]  }
   0x1   :  { %v541_v0 = vld [vmem:[%s732_s1 + $0x40] sm:$0xff]   ;;  %v545_v4 = vld [vmem:[%s732_s1 + $0x48] sm:$0xff]   ;;  %v549_v8 = vld [vmem:[%s732_s1 + $0x50] sm:$0xff]  }
   0x2   :  { %v542_v1 = vld [vmem:[%s732_s1 + $0xc0] sm:$0xff]   ;;  %485 = vmatprep.subr.bf16.mxu0 %v541_v0  ;;  %v546_v5 = vld [vmem:[%s732_s1 + $0xc8] sm:$0xff]   ;;  %v550_v9 = vld [vmem:[%s732_s1 + $0xd0] sm:$0xff]  }
   0x3   :  { %v543_v2 = vld [vmem:[%s732_s1] sm:$0xff]   ;;  %513 = vmatprep.subr.bf16.mxu1 %v542_v1  ;;  %v547_v6 = vld [vmem:[%s732_s1 + $0x8] sm:$0xff]   ;;  %v551_v10 = vld [vmem:[%s732_s1 + $0x10] sm:$0xff]  }
   0x4   :  { %v544_v3 = vld [vmem:[%s732_s1 + $0x80] sm:$0xff]   ;;  %486 = vmatpush3.bf16.msra.mxu0 %v543_v2  ;;  %v548_v7 = vld [vmem:[%s732_s1 + $0x88] sm:$0xff]   ;;  %v552_v11 = vld [vmem:[%s732_s1 + $0x90] sm:$0xff]  }
   0x5   :  { %514 = vmatpush3.bf16.msra.mxu1 %v544_v3  ;;  %487 = vmatprep.subr.bf16.mxu0 %v545_v4  ;;  %v553_v12 = vld [vmem:[%s732_s1 + $0x58] sm:$0xff]   ;;  %v557_v16 = vld [vmem:[%s732_s1 + $0x60] sm:$0xff]   ;;  %v561_v20 = vld [vmem:[%s732_s1 + $0x68] sm:$0xff]  }
   0x6   :  { %515 = vmatprep.subr.bf16.mxu1 %v546_v5  ;;  %v554_v13 = vld [vmem:[%s732_s1 + $0xd8] sm:$0xff]   ;;  %v558_v17 = vld [vmem:[%s732_s1 + $0xe0] sm:$0xff]   ;;  %v562_v21 = vld [vmem:[%s732_s1 + $0xe8] sm:$0xff]  }
   0x7   :  { %v555_v14 = vld [vmem:[%s732_s1 + $0x18] sm:$0xff]   ;;  %v559_v18 = vld [vmem:[%s732_s1 + $0x20] sm:$0xff]   ;;  %v563_v22 = vld [vmem:[%s732_s1 + $0x28] sm:$0xff]  }
   0x8   :  { %488 = vmatpush3.bf16.msra.mxu0 %v547_v6  ;;  %v556_v15 = vld [vmem:[%s732_s1 + $0x98] sm:$0xff]   ;;  %v560_v19 = vld [vmem:[%s732_s1 + $0xa0] sm:$0xff]   ;;  %v564_v23 = vld [vmem:[%s732_s1 + $0xa8] sm:$0xff]  }
   0x9   :  { %516 = vmatpush3.bf16.msra.mxu1 %v548_v7  ;;  %489 = vmatprep.subr.bf16.mxu0 %v549_v8  ;;  %v565_v24 = vld [vmem:[%s732_s1 + $0x70] sm:$0xff]   ;;  %v569_v28 = vld [vmem:[%s732_s1 + $0x78] sm:$0xff]   ;;  %v19_v36 = vld [vmem:[%s733_s0 + $0x20] sm:$0xff] }
   0xa   :  { %517 = vmatprep.subr.bf16.mxu1 %v550_v9  ;;  %v566_v25 = vld [vmem:[%s732_s1 + $0xf0] sm:$0xff]   ;;  %v570_v29 = vld [vmem:[%s732_s1 + $0xf8] sm:$0xff]   ;;  %v444_v37 = vcombine.high %v19_v36, %v19_v36  ;;  %v20_v38 = vld [vmem:[%s733_s0 + $0x28] sm:$0xff]  ;;  %v443_v40 = vcombine.low %v19_v36, %v19_v36 }
   0xb   :  { %v567_v26 = vld [vmem:[%s732_s1 + $0x30] sm:$0xff]   ;;  %v571_v30 = vld [vmem:[%s732_s1 + $0x38] sm:$0xff]   ;;  %v446_v39 = vcombine.high %v20_v38, %v20_v38  ;;  %v445_v41 = vcombine.low %v20_v38, %v20_v38  ;;  %v438_v44 = vld [vmem:[%s734_s2] ss:$0 sm:$0xff] }
   0xc   :  { %490 = vmatpush3.bf16.msra.mxu0 %v551_v10  ;;  %v568_v27 = vld [vmem:[%s732_s1 + $0xb0] sm:$0xff]   ;;  %v572_v31 = vld [vmem:[%s732_s1 + $0xb8] sm:$0xff]  }
   0xd   :  { %518 = vmatpush3.bf16.msra.mxu1 %v552_v11  ;;  %491 = vmatprep.subr.bf16.mxu0 %v553_v12  ;;  %v573_v32 = vld [vmem:[%s733_s0] ss:$16 sps:$4 sm:$0xff]   ;;  %v575_v33 = vld [vmem:[%s733_s0 + $0x4] ss:$16 sps:$4 sm:$0xff]   ;;  %v576_v34 = vld [vmem:[%s733_s0 + $0x8] ss:$16 sps:$4 sm:$0xff]  }
   0xe   :  { %519 = vmatprep.subr.bf16.mxu1 %v554_v13  ;;  %v578_v35 = vld [vmem:[%s733_s0 + $0xc] ss:$16 sps:$4 sm:$0xff]   ;;  %350 = vmatprep.mubr.bf16.mxu0 %v575_v33 }
   0xf   :  { %398 = vmatprep.mubr.bf16.mxu1 %v578_v35 }
  0x10   :  { %492 = vmatpush3.bf16.msra.mxu0 %v555_v14 }
  0x11   :  { %520 = vmatpush3.bf16.msra.mxu1 %v556_v15  ;;  %493 = vmatprep.subr.bf16.mxu0 %v557_v16 }
  0x12   :  { %521 = vmatprep.subr.bf16.mxu1 %v558_v17 }
  0x14   :  { %494 = vmatpush3.bf16.msra.mxu0 %v559_v18 }
  0x15   :  { %522 = vmatpush3.bf16.msra.mxu1 %v560_v19  ;;  %495 = vmatprep.subr.bf16.mxu0 %v561_v20 }
  0x16   :  { %523 = vmatprep.subr.bf16.mxu1 %v562_v21 }
  0x18   :  { %496 = vmatpush3.bf16.msra.mxu0 %v563_v22 }
  0x19   :  { %524 = vmatpush3.bf16.msra.mxu1 %v564_v23  ;;  %497 = vmatprep.subr.bf16.mxu0 %v565_v24 }
  0x1a   :  { %525 = vmatprep.subr.bf16.mxu1 %v566_v25 }
  0x1c   :  { %498 = vmatpush3.bf16.msra.mxu0 %v567_v26 }
  0x1d   :  { %526 = vmatpush3.bf16.msra.mxu1 %v568_v27  ;;  %499 = vmatprep.subr.bf16.mxu0 %v569_v28 }
  0x1e   :  { %527 = vmatprep.subr.bf16.mxu1 %v570_v29 }
  0x20   :  { %500 = vmatpush3.bf16.msra.mxu0 %v571_v30 }
  0x21   :  { %528 = vmatpush3.bf16.msra.mxu1 %v572_v31 }
  0x23   :  { %351 = vmatmul.mubr.bf16.vlgmr.msra.gmra.mrb[0].mxu0 %v573_v32 }
  0x24   :  { %399 = vmatmul.mubr.bf16.vlgmr.msra.gmra.mrb[0].mxu1 %v576_v34  ;;  %358 = vmatprep.mubr.bf16.mxu0 %v444_v37 }
  0x25   :  { %406 = vmatprep.mubr.bf16.mxu1 %v446_v39 }
  0x2b   :  { %359 = vmatmul.mubr.bf16.gmra.mrb[4].mxu0 %v443_v40 }
  0x2c   :  { %407 = vmatmul.mubr.bf16.gmra.mrb[4].mxu1 %v445_v41 }
  0xf6   :  { %v501_v42 = vpop.f32.mrb[0].mxu0 }
  0xf7   :  { %v529_v43 = vpop.f32.mrb[0].mxu1  ;;  %v502_v45 = vpop.f32.mrb[1].mxu0 }
  0xf8   :  { %v503_v46 = vadd.f32 %v502_v45, %v501_v42  ;;  %v530_v47 = vpop.f32.mrb[1].mxu1  ;;  %v504_v48 = vpop.f32.mrb[2].mxu0 }
  0xf9   :  { %v531_v49 = vadd.f32 %v530_v47, %v529_v43  ;;  %v532_v50 = vpop.f32.mrb[2].mxu1  ;;  %v505_v51 = vpop.f32.mrb[3].mxu0 }
  0xfa   :  { %v353_v52 = vadd.f32 %v503_v46, %v438_v44  ;;  %v506_v53 = vadd.f32 %v505_v51, %v504_v48  ;;  %v533_v54 = vpop.f32.mrb[3].mxu1 }
  0xfb   :  { %v534_v55 = vadd.f32 %v533_v54, %v532_v50 }
  0xfc   :  { %v401_v56 = vadd.f32 %v531_v49, %v353_v52  ;;  %v356_v57 = vadd.f32 %v506_v53, %v438_v44 }
  0xfe   :  { %v414_v58 = vmax.f32 %v401_v56, 0.0  ;;  %v404_v59 = vadd.f32 %v534_v55, %v356_v57  ;;  %v507_v60 = vpop.f32.mrb[4].mxu0 }
  0xff   :  { %v535_v61 = vpop.f32.mrb[4].mxu1  ;;  %v508_v62 = vpop.f32.mrb[5].mxu0 }
 0x100   :  { %v482_v63 = vpack.c.bf16 %v414_v58, %v414_v58  ;;  %v415_v0 = vmax.f32 %v404_v59, 0.0  ;;  %v509_v1 = vadd.f32 %v508_v62, %v507_v60  ;;  %v536_v2 = vpop.f32.mrb[5].mxu1  ;;  %v510_v3 = vpop.f32.mrb[6].mxu0 }
 0x101   :  { %v537_v4 = vadd.f32 %v536_v2, %v535_v61  ;;  %v538_v5 = vpop.f32.mrb[6].mxu1  ;;  %v511_v6 = vpop.f32.mrb[7].mxu0 }
 0x102   :  { %431 = vst.msk [vmem:[%s735_s3] sm:$0xf] %vm430_vm0, %v482_v63  ;;  %v483_v7 = vpack.c.bf16 %v415_v0, %v415_v0  ;;  %v361_v8 = vadd.f32 %v509_v1, %v438_v44  ;;  %v539_v9 = vpop.f32.mrb[7].mxu1 }
 0x104   :  { %432 = vst.msk [vmem:[%s735_s3 + $0x4] sm:$0xf] %vm430_vm0, %v483_v7  ;;  %v409_v10 = vadd.f32 %v537_v4, %v361_v8 }
 0x106   :  { %v416_v11 = vmax.f32 %v409_v10, 0.0 }
 0x108   :  { %v484_v12 = vpack.c.bf16 %v416_v11, %v416_v11 }
 0x10a   :  { %433 = vst.msk [vmem:[%s735_s3 + $0x8] sm:$0xf] %vm430_vm0, %v484_v12 }

// kernel: async_ddqn_cnn_forward.6
= control target key start
LH: loop header
LB: loop body
LE: loop exit
PB: predicated region body
PF: predicated region fallthrough
CT: control target
= control target key end

     0   :  { %v609_v35 = vmov 0.0   ;;  %vm610_vm0 = vmmov 0   ;;  %vm330_vm1 = vcmask 523264   ;;  %vm456_vm2 = vcmask 519168   ;;  %s754_s1 = inlined_call_operand.vmem [shape: bf16[576,64], index: 1, kind: input, shape index: {}]   ;;  %s755_s0 = inlined_call_operand.vmem [shape: bf16[8,576], index: 0, kind: input, shape index: {}]   ;;  %s756_s2 = inlined_call_operand.vmem [shape: f32[1,64], index: 2, kind: input, shape index: {}]   ;;  %s757_s3 = inlined_call_operand.vmem [shape: bf16[8,64], index: 3, kind: output, shape index: {}]  }
   0x1   :  { %v568_v0 = vld [vmem:[%s754_s1 + $0x40] sm:$0xff]   ;;  %v572_v4 = vld [vmem:[%s754_s1 + $0x48] sm:$0xff]   ;;  %v576_v8 = vld [vmem:[%s754_s1 + $0x50] sm:$0xff]  }
   0x2   :  { %v569_v1 = vld [vmem:[%s754_s1] sm:$0xff]   ;;  %505 = vmatprep.subr.bf16.mxu0 %v568_v0  ;;  %v573_v5 = vld [vmem:[%s754_s1 + $0x8] sm:$0xff]   ;;  %v577_v9 = vld [vmem:[%s754_s1 + $0x10] sm:$0xff]  }
   0x3   :  { %v570_v2 = vld [vmem:[%s754_s1 + $0xc0] sm:$0xff]   ;;  %506 = vmatpush3.bf16.msra.mxu0 %v569_v1  ;;  %v574_v6 = vld [vmem:[%s754_s1 + $0xc8] sm:$0xff]   ;;  %v578_v10 = vld [vmem:[%s754_s1 + $0xd0] sm:$0xff]  }
   0x4   :  { %v571_v3 = vld [vmem:[%s754_s1 + $0x80] sm:$0xff]   ;;  %527 = vmatprep.subr.bf16.mxu1 %v570_v2  ;;  %507 = vmatprep.subr.bf16.mxu0 %v572_v4  ;;  %v575_v7 = vld [vmem:[%s754_s1 + $0x88] sm:$0xff]   ;;  %v579_v11 = vld [vmem:[%s754_s1 + $0x90] sm:$0xff]  }
   0x5   :  { %528 = vmatpush3.bf16.msra.mxu1 %v571_v3  ;;  %v580_v12 = vld [vmem:[%s754_s1 + $0x58] sm:$0xff]   ;;  %v584_v16 = vld [vmem:[%s754_s1 + $0x60] sm:$0xff]   ;;  %v588_v20 = vld [vmem:[%s754_s1 + $0x68] sm:$0xff]  }
   0x6   :  { %529 = vmatprep.subr.bf16.mxu1 %v574_v6  ;;  %v581_v13 = vld [vmem:[%s754_s1 + $0x18] sm:$0xff]   ;;  %v585_v17 = vld [vmem:[%s754_s1 + $0x20] sm:$0xff]   ;;  %v589_v21 = vld [vmem:[%s754_s1 + $0x28] sm:$0xff]  }
   0x7   :  { %508 = vmatpush3.bf16.msra.mxu0 %v573_v5  ;;  %v582_v14 = vld [vmem:[%s754_s1 + $0xd8] sm:$0xff]   ;;  %v586_v18 = vld [vmem:[%s754_s1 + $0xe0] sm:$0xff]   ;;  %v590_v22 = vld [vmem:[%s754_s1 + $0xe8] sm:$0xff]  }
   0x8   :  { %509 = vmatprep.subr.bf16.mxu0 %v576_v8  ;;  %v583_v15 = vld [vmem:[%s754_s1 + $0x98] sm:$0xff]   ;;  %v587_v19 = vld [vmem:[%s754_s1 + $0xa0] sm:$0xff]   ;;  %v591_v23 = vld [vmem:[%s754_s1 + $0xa8] sm:$0xff]  }
   0x9   :  { %530 = vmatpush3.bf16.msra.mxu1 %v575_v7  ;;  %v592_v24 = vld [vmem:[%s754_s1 + $0x70] sm:$0xff]   ;;  %v596_v28 = vld [vmem:[%s754_s1 + $0x78] sm:$0xff]   ;;  %v15_v31 = vld [vmem:[%s755_s0] sm:$0xff] }
   0xa   :  { %531 = vmatprep.subr.bf16.mxu1 %v578_v10  ;;  %v593_v25 = vld [vmem:[%s754_s1 + $0x30] sm:$0xff]   ;;  %v597_v29 = vld [vmem:[%s754_s1 + $0x38] sm:$0xff]   ;;  %v463_v32 = vcombine.low %v15_v31, %v15_v31  ;;  %v464_v33 = vcombine.high %v15_v31, %v15_v31  ;;  %v16_v36 = vld [vmem:[%s755_s0 + $0x8] sm:$0xff] }
   0xb   :  { %510 = vmatpush3.bf16.msra.mxu0 %v577_v9  ;;  %v594_v26 = vld [vmem:[%s754_s1 + $0xf0] sm:$0xff]   ;;  %v598_v30 = vld [vmem:[%s754_s1 + $0xf8] sm:$0xff]   ;;  %v465_v37 = vcombine.low %v16_v36, %v16_v36  ;;  %v466_v38 = vcombine.high %v16_v36, %v16_v36  ;;  %v605_v39 = vld [vmem:[%s754_s1 + $0x100] sm:$0xff]  }
   0xc   :  { %511 = vmatprep.subr.bf16.mxu0 %v580_v12  ;;  %v595_v27 = vld [vmem:[%s754_s1 + $0xb0] sm:$0xff]   ;;  %v602_v34 = vld [vmem:[%s754_s1 + $0xb8] sm:$0xff]   ;;  %366 = vmatprep.mubr.bf16.mxu0 %v464_v33  ;;  %v606_v40 = vld [vmem:[%s754_s1 + $0x108] sm:$0xff]  }
   0xd   :  { %532 = vmatpush3.bf16.msra.mxu1 %v579_v11  ;;  %406 = vmatprep.mubr.bf16.mxu1 %v466_v38  ;;  %v607_v41 = vld [vmem:[%s754_s1 + $0x110] sm:$0xff]   ;;  %v608_v42 = vld [vmem:[%s754_s1 + $0x118] sm:$0xff]   ;;  %v462_v45 = vld [vmem:[%s756_s2] ss:$0 sm:$0xff] }
   0xe   :  { %533 = vmatprep.subr.bf16.mxu1 %v582_v14  ;;  %v601_v43 = vld [vmem:[%s755_s0 + $0x10] ss:$0 sps:$4 sm:$0xff]  }
   0xf   :  { %512 = vmatpush3.bf16.msra.mxu0 %v581_v13 }
  0x10   :  { %513 = vmatprep.subr.bf16.mxu0 %v584_v16 }
  0x11   :  { %534 = vmatpush3.bf16.msra.mxu1 %v583_v15 }
  0x12   :  { %535 = vmatprep.subr.bf16.mxu1 %v586_v18 }
  0x13   :  { %514 = vmatpush3.bf16.msra.mxu0 %v585_v17 }
  0x14   :  { %515 = vmatprep.subr.bf16.mxu0 %v588_v20 }
  0x15   :  { %536 = vmatpush3.bf16.msra.mxu1 %v587_v19 }
  0x16   :  { %537 = vmatprep.subr.bf16.mxu1 %v590_v22 }
  0x17   :  { %516 = vmatpush3.bf16.msra.mxu0 %v589_v21 }
  0x18   :  { %517 = vmatprep.subr.bf16.mxu0 %v592_v24 }
  0x19   :  { %538 = vmatpush3.bf16.msra.mxu1 %v591_v23 }
  0x1a   :  { %539 = vmatprep.subr.bf16.mxu1 %v594_v26 }
  0x1b   :  { %518 = vmatpush3.bf16.msra.mxu0 %v593_v25 }
  0x1c   :  { %519 = vmatprep.subr.bf16.mxu0 %v596_v28 }
  0x1d   :  { %540 = vmatpush3.bf16.msra.mxu1 %v595_v27 }
  0x1e   :  { %541 = vmatprep.subr.bf16.mxu1 %v598_v30 }
  0x1f   :  { %520 = vmatpush3.bf16.msra.mxu0 %v597_v29 }
  0x20   :  { %554 = vmatprep.subr.bf16.mxu0 %v609_v35 }
  0x21   :  { %542 = vmatpush3.bf16.msra.mxu1 %v602_v34 }
  0x22   :  { %367 = vmatmul.mubr.bf16.vlgmr.msra.gmra.mrb[0].mxu0 %v463_v32 }
  0x23   :  { %555 = vmatpush3.bf16.msra.mxu0 %v605_v39  ;;  %562 = vmatprep.mubr.msk.bf16.mxu0 %vm610_vm0, %v609_v35 }
  0x24   :  { %407 = vmatmul.mubr.bf16.vlgmr.msra.gmra.mrb[0].mxu1 %v465_v37  ;;  %556 = vmatprep.subr.bf16.mxu0 %v609_v35 }
  0x27   :  { %557 = vmatpush3.bf16.msra.mxu0 %v606_v40 }
  0x28   :  { %558 = vmatprep.subr.bf16.mxu0 %v609_v35 }
  0x2b   :  { %559 = vmatpush3.bf16.msra.mxu0 %v607_v41 }
  0x2c   :  { %560 = vmatprep.subr.bf16.mxu0 %v609_v35 }
  0x2f   :  { %561 = vmatpush3.bf16.msra.mxu0 %v608_v42 }
  0x32   :  { %563 = vmatmul.mubr.msk.bf16.vlgmr.msra.gmra.mrb[4].mxu0 %vm330_vm1, %v601_v43 }
  0xf5   :  { %v521_v44 = vpop.f32.mrb[0].mxu0 }
  0xf6   :  { %v522_v46 = vpop.f32.mrb[1].mxu0 }
  0xf7   :  { %v523_v47 = vadd.f32 %v522_v46, %v521_v44  ;;  %v524_v48 = vpop.f32.mrb[2].mxu0  ;;  %v543_v49 = vpop.f32.mrb[0].mxu1 }
  0xf8   :  { %v525_v50 = vpop.f32.mrb[3].mxu0  ;;  %v544_v51 = vpop.f32.mrb[1].mxu1 }
  0xf9   :  { %v369_v52 = vadd.f32 %v523_v47, %v462_v45  ;;  %v545_v53 = vadd.f32 %v544_v51, %v543_v49  ;;  %v546_v54 = vpop.f32.mrb[2].mxu1 }
  0xfa   :  { %v547_v55 = vpop.f32.mrb[3].mxu1 }
  0xfb   :  { %v409_v56 = vadd.f32 %v545_v53, %v369_v52 }
 0x105   :  { %v448_v57 = vpop.f32.mrb[4].mxu0 }
 0x106   :  { %v449_v58 = vadd.f32 %v448_v57, %v409_v56  ;;  %v564_v59 = vpop.f32.mrb[5].mxu0 }
 0x107   :  { %v451_v60 = vpop.f32.mrb[6].mxu0 }
 0x108   :  { %v454_v61 = vmax.f32 %v449_v58, 0.0  ;;  %v565_v62 = vpop.f32.mrb[7].mxu0 }
 0x10a   :  { %v455_v63 = vpack.c.bf16 %v454_v61, %v454_v61 }
 0x10c   :  { %457 = vst.msk [vmem:[%s757_s3] sm:$0xf] %vm456_vm2, %v455_v63 }

// kernel: async_ddqn_cnn_forward.7
= control target key start
LH: loop header
LB: loop body
LE: loop exit
PB: predicated region body
PF: predicated region fallthrough
CT: control target
= control target key end

     0   :  { %v1468_v1 = vmov 0   ;;  %vm149_vm0 = vcmask 523264   ;;  %s1851_s1 = inlined_call_operand.vmem [shape: bf16[64,512], index: 1, kind: input, shape index: {}]   ;;  %s1852_s3 = inlined_call_operand.vmem [shape: bf16[64,512], index: 3, kind: input, shape index: {}]   ;;  %s1853_s0 = inlined_call_operand.vmem [shape: bf16[8,64], index: 0, kind: input, shape index: {}]   ;;  %s1854_s6 = inlined_call_operand.vmem [shape: bf16[512,128], index: 6, kind: input, shape index: {}]   ;;  %s1855_s5 = inlined_call_operand.vmem [shape: bf16[512,128], index: 5, kind: input, shape index: {}]   ;;  %s1856_s2 = inlined_call_operand.vmem [shape: f32[1,512], index: 2, kind: input, shape index: {}]   ;;  %s1857_s4 = inlined_call_operand.vmem [shape: f32[1,512], index: 4, kind: input, shape index: {}]   ;;  %s1858_s7 = inlined_call_operand.vmem [shape: f32[1,128], index: 7, kind: input, shape index: {}]   ;;  %s1859_s8 = inlined_call_operand.vmem [shape: f32[8,128], index: 8, kind: output, shape index: {}]  }
   0x1   :  { %v1356_v0 = vld [vmem:[%s1851_s1 + $0x4] ss:$16 sps:$4 sm:$0xff]   ;;  %185 = vmatprep.mubr.bf16.mxu0 %v1468_v1  ;;  %226 = vmatprep.mubr.bf16.mxu1 %v1468_v1  ;;  %v1358_v2 = vld [vmem:[%s1851_s1 + $0xc] ss:$16 sps:$4 sm:$0xff]   ;;  %v1360_v3 = vld [vmem:[%s1851_s1] ss:$16 sps:$4 sm:$0xff]  }
   0x2   :  { %153 = vmatprep.subr.bf16.mxu0 %v1356_v0  ;;  %v1361_v4 = vld [vmem:[%s1851_s1 + $0x8] ss:$16 sps:$4 sm:$0xff]   ;;  %194 = vmatprep.subr.bf16.mxu1 %v1358_v2  ;;  %v1362_v5 = vld [vmem:[%s1851_s1 + $0x24] ss:$16 sps:$4 sm:$0xff]   ;;  %v1364_v6 = vld [vmem:[%s1851_s1 + $0x2c] ss:$16 sps:$4 sm:$0xff]  }
   0x3   :  { %154 = vmatpush1.bf16.msra.mxu0 %v1360_v3  ;;  %195 = vmatpush1.bf16.msra.mxu1 %v1361_v4  ;;  %v1366_v7 = vld [vmem:[%s1851_s1 + $0x20] ss:$16 sps:$4 sm:$0xff]   ;;  %v1367_v8 = vld [vmem:[%s1851_s1 + $0x28] ss:$16 sps:$4 sm:$0xff]   ;;  %v1368_v9 = vld [vmem:[%s1851_s1 + $0x44] ss:$16 sps:$4 sm:$0xff]  }
   0x4   :  { %155 = vmatprep.subr.bf16.mxu0 %v1362_v5  ;;  %196 = vmatprep.subr.bf16.mxu1 %v1364_v6  ;;  %v1370_v10 = vld [vmem:[%s1851_s1 + $0x4c] ss:$16 sps:$4 sm:$0xff]   ;;  %v1372_v11 = vld [vmem:[%s1851_s1 + $0x40] ss:$16 sps:$4 sm:$0xff]   ;;  %v1373_v12 = vld [vmem:[%s1851_s1 + $0x48] ss:$16 sps:$4 sm:$0xff]   ;;  %v49_v6 = vlaneseq }
   0x5   :  { %v1374_v13 = vld [vmem:[%s1851_s1 + $0x64] ss:$16 sps:$4 sm:$0xff]   ;;  %v1376_v14 = vld [vmem:[%s1851_s1 + $0x6c] ss:$16 sps:$4 sm:$0xff]   ;;  %v1378_v15 = vld [vmem:[%s1851_s1 + $0x60] ss:$16 sps:$4 sm:$0xff]  }
   0x6   :  { %v1379_v16 = vld [vmem:[%s1851_s1 + $0x68] ss:$16 sps:$4 sm:$0xff]   ;;  %v1382_v17 = vld [vmem:[%s1852_s3 + $0x4] ss:$16 sps:$4 sm:$0xff]   ;;  %v1385_v18 = vld [vmem:[%s1852_s3 + $0xc] ss:$16 sps:$4 sm:$0xff]  }
   0x7   :  { %156 = vmatpush1.bf16.msra.mxu0 %v1366_v7  ;;  %197 = vmatpush1.bf16.msra.mxu1 %v1367_v8  ;;  %v30_v19 = vld [vmem:[%s1853_s0] sm:$0xf]  ;;  %v1383_v21 = vld [vmem:[%s1852_s3 + $0x8] ss:$16 sps:$4 sm:$0xff]   ;;  %v1388_v22 = vld [vmem:[%s1852_s3 + $0x24] ss:$16 sps:$4 sm:$0xff]  }
   0x8   :  { %157 = vmatprep.subr.bf16.mxu0 %v1368_v9  ;;  %198 = vmatprep.subr.bf16.mxu1 %v1370_v10  ;;  %v1380_v20 = vld [vmem:[%s1852_s3] ss:$16 sps:$4 sm:$0xff]   ;;  %v1391_v23 = vld [vmem:[%s1852_s3 + $0x2c] ss:$16 sps:$4 sm:$0xff]   ;;  %v1389_v25 = vld [vmem:[%s1852_s3 + $0x28] ss:$16 sps:$4 sm:$0xff]  }
   0x9   :  { %v1386_v24 = vld [vmem:[%s1852_s3 + $0x20] ss:$16 sps:$4 sm:$0xff]   ;;  %v1394_v26 = vld [vmem:[%s1852_s3 + $0x44] ss:$16 sps:$4 sm:$0xff]   ;;  %v1397_v27 = vld [vmem:[%s1852_s3 + $0x4c] ss:$16 sps:$4 sm:$0xff]  }
   0xa   :  { %v1392_v28 = vld [vmem:[%s1852_s3 + $0x40] ss:$16 sps:$4 sm:$0xff]   ;;  %v1395_v29 = vld [vmem:[%s1852_s3 + $0x48] ss:$16 sps:$4 sm:$0xff]   ;;  %v1400_v30 = vld [vmem:[%s1852_s3 + $0x64] ss:$16 sps:$4 sm:$0xff]  }
   0xb   :  { %158 = vmatpush1.bf16.msra.mxu0 %v1372_v11  ;;  %199 = vmatpush1.bf16.msra.mxu1 %v1373_v12  ;;  %v1403_v31 = vld [vmem:[%s1852_s3 + $0x6c] ss:$16 sps:$4 sm:$0xff]   ;;  %v1398_v32 = vld [vmem:[%s1852_s3 + $0x60] ss:$16 sps:$4 sm:$0xff]   ;;  %v1401_v33 = vld [vmem:[%s1852_s3 + $0x68] ss:$16 sps:$4 sm:$0xff]  }
   0xc   :  { %159 = vmatprep.subr.bf16.mxu0 %v1374_v13  ;;  %200 = vmatprep.subr.bf16.mxu1 %v1376_v14  ;;  %v1404_v34 = vld [vmem:[%s1854_s6 + $0x40] sm:$0xff]   ;;  %v1408_v38 = vld [vmem:[%s1854_s6 + $0x48] sm:$0xff]   ;;  %v1412_v42 = vld [vmem:[%s1854_s6 + $0x50] sm:$0xff]   ;;  %v1725_v13 = vshrl.u32 %v49_v6, 7 }
   0xd   :  { %v1405_v35 = vld [vmem:[%s1854_s6 + $0xc0] sm:$0xff]   ;;  %v1409_v39 = vld [vmem:[%s1854_s6 + $0xc8] sm:$0xff]   ;;  %v1413_v43 = vld [vmem:[%s1854_s6 + $0xd0] sm:$0xff]  }
   0xe   :  { %v1406_v36 = vld [vmem:[%s1854_s6] sm:$0xff]   ;;  %v1410_v40 = vld [vmem:[%s1854_s6 + $0x8] sm:$0xff]   ;;  %v1414_v44 = vld [vmem:[%s1854_s6 + $0x10] sm:$0xff]   ;;  %v55_v14 = vsub.s32 1, %v1725_v13  ;;  %vm1135_vm1 = vcmp.lt.s32.totalorder %v1725_v13, 2 }
   0xf   :  { %160 = vmatpush1.bf16.msra.mxu0 %v1378_v15  ;;  %201 = vmatpush1.bf16.msra.mxu1 %v1379_v16  ;;  %v1407_v37 = vld [vmem:[%s1854_s6 + $0x80] sm:$0xff]   ;;  %v1411_v41 = vld [vmem:[%s1854_s6 + $0x88] sm:$0xff]   ;;  %v1415_v45 = vld [vmem:[%s1854_s6 + $0x90] sm:$0xff]   ;;  %v63_v15 = vsub.s32 3, %v1725_v13 }
  0x10   :  { %361 = vmatprep.subr.bf16.mxu0 %v1382_v17  ;;  %402 = vmatprep.subr.bf16.mxu1 %v1385_v18  ;;  %v1416_v46 = vld [vmem:[%s1854_s6 + $0x58] sm:$0xff]   ;;  %v1420_v50 = vld [vmem:[%s1854_s6 + $0x60] sm:$0xff]   ;;  %v1424_v54 = vld [vmem:[%s1854_s6 + $0x68] sm:$0xff]   ;;  %v51_v18 = vsub.s32 0, %v1725_v13 }
  0x11   :  { %v1417_v47 = vld [vmem:[%s1854_s6 + $0xd8] sm:$0xff]   ;;  %v1421_v51 = vld [vmem:[%s1854_s6 + $0xe0] sm:$0xff]   ;;  %v1425_v55 = vld [vmem:[%s1854_s6 + $0xe8] sm:$0xff]  }
  0x12   :  { %1178 = vmatmul.mubr.msk.bf16.vlgmr.msra.gmra.mrb[0].mxu0 %vm149_vm0, %v30_v19  ;;  %1179 = vmatmul.mubr.msk.bf16.vlgmr.msra.gmra.mrb[0].mxu1 %vm149_vm0, %v30_v19  ;;  %v1418_v48 = vld [vmem:[%s1854_s6 + $0x18] sm:$0xff]   ;;  %v1422_v52 = vld [vmem:[%s1854_s6 + $0x20] sm:$0xff]   ;;  %v1426_v56 = vld [vmem:[%s1854_s6 + $0x28] sm:$0xff]  }
  0x13   :  { %362 = vmatpush1.bf16.msra.mxu0 %v1380_v20  ;;  %403 = vmatpush1.bf16.msra.mxu1 %v1383_v21  ;;  %v1419_v49 = vld [vmem:[%s1854_s6 + $0x98] sm:$0xff]   ;;  %v1423_v53 = vld [vmem:[%s1854_s6 + $0xa0] sm:$0xff]   ;;  %v1427_v57 = vld [vmem:[%s1854_s6 + $0xa8] sm:$0xff]  }
  0x14   :  { %363 = vmatprep.subr.bf16.mxu0 %v1388_v22  ;;  %404 = vmatprep.subr.bf16.mxu1 %v1391_v23  ;;  %v1428_v58 = vld [vmem:[%s1854_s6 + $0x70] sm:$0xff]   ;;  %v1432_v62 = vld [vmem:[%s1854_s6 + $0x78] sm:$0xff]   ;;  %v1436_v2 = vld [vmem:[%s1855_s5 + $0x40] sm:$0xff]  }
  0x15   :  { %393 = vmatprep.mubr.bf16.mxu0 %v1468_v1  ;;  %434 = vmatprep.mubr.bf16.mxu1 %v1468_v1  ;;  %v1429_v59 = vld [vmem:[%s1854_s6 + $0xf0] sm:$0xff]   ;;  %v1433_v63 = vld [vmem:[%s1854_s6 + $0xf8] sm:$0xff]   ;;  %v1437_v3 = vld [vmem:[%s1855_s5 + $0xc0] sm:$0xff]  }
  0x16   :  { %v1430_v60 = vld [vmem:[%s1854_s6 + $0x30] sm:$0xff]   ;;  %v1434_v0 = vld [vmem:[%s1854_s6 + $0x38] sm:$0xff]   ;;  %v1732_v16 = vld [vmem:[%s1856_s2] sm:$0xf] }
  0x17   :  { %364 = vmatpush1.bf16.msra.mxu0 %v1386_v24  ;;  %405 = vmatpush1.bf16.msra.mxu1 %v1389_v25  ;;  %v1431_v61 = vld [vmem:[%s1854_s6 + $0xb0] sm:$0xff]   ;;  %v1435_v1 = vld [vmem:[%s1854_s6 + $0xb8] sm:$0xff]   ;;  %v259_v17 = vld [vmem:[%s1857_s4] sm:$0xf]  ;;  %v56_v20 = vrot.slane %v1732_v16, %v55_v14  ;;  %v64_v21 = vrot.slane %v1732_v16, %v63_v15 }
  0x18   :  { %365 = vmatprep.subr.bf16.mxu0 %v1394_v26  ;;  %406 = vmatprep.subr.bf16.mxu1 %v1397_v27  ;;  %v264_v22 = vrot.slane %v259_v17, %v51_v18  ;;  %v268_v24 = vrot.slane %v259_v17, %v55_v14  ;;  %v276_v25 = vrot.slane %v259_v17, %v63_v15 }
  0x19   :  { %v52_v14 = vrot.slane %v1732_v16, %v51_v18  ;;  %v1462_v18 = vld [vmem:[%s1855_s5 + $0x30] sm:$0xff]  }
  0x1b   :  { %366 = vmatpush1.bf16.msra.mxu0 %v1392_v28  ;;  %407 = vmatpush1.bf16.msra.mxu1 %v1395_v29 }
  0x1c   :  { %367 = vmatprep.subr.bf16.mxu0 %v1400_v30  ;;  %408 = vmatprep.subr.bf16.mxu1 %v1403_v31 }
  0x1f   :  { %368 = vmatpush1.bf16.msra.mxu0 %v1398_v32  ;;  %409 = vmatpush1.bf16.msra.mxu1 %v1401_v33 }
  0x20   :  { %1263 = vmatprep.subr.bf16.mxu0 %v1404_v34  ;;  %1285 = vmatprep.subr.bf16.mxu1 %v1405_v35 }
  0x22   :  { %1196 = vmatmul.mubr.msk.bf16.vlgmr.msra.gmra.mrb[4].mxu0 %vm149_vm0, %v30_v19  ;;  %1197 = vmatmul.mubr.msk.bf16.vlgmr.msra.gmra.mrb[4].mxu1 %vm149_vm0, %v30_v19  ;;  %v59_v19 = vsub.s32 2, %v1725_v13 }
  0x23   :  { %1264 = vmatpush3.bf16.msra.mxu0 %v1406_v36  ;;  %1286 = vmatpush3.bf16.msra.mxu1 %v1407_v37 }
  0x24   :  { %1265 = vmatprep.subr.bf16.mxu0 %v1408_v38  ;;  %1287 = vmatprep.subr.bf16.mxu1 %v1409_v39  ;;  %v272_v23 = vrot.slane %v259_v17, %v59_v19  ;;  %v60_v15 = vrot.slane %v1732_v16, %v59_v19  ;;  %v1460_v17 = vld [vmem:[%s1855_s5 + $0x70] sm:$0xff]  }
  0x25   :  { %v1463_v16 = vld [vmem:[%s1855_s5 + $0xb0] sm:$0xff]  }
  0x27   :  { %1266 = vmatpush3.bf16.msra.mxu0 %v1410_v40  ;;  %1288 = vmatpush3.bf16.msra.mxu1 %v1411_v41 }
  0x28   :  { %1267 = vmatprep.subr.bf16.mxu0 %v1412_v42  ;;  %1289 = vmatprep.subr.bf16.mxu1 %v1413_v43 }
  0x2b   :  { %1268 = vmatpush3.bf16.msra.mxu0 %v1414_v44  ;;  %1290 = vmatpush3.bf16.msra.mxu1 %v1415_v45 }
  0x2c   :  { %1269 = vmatprep.subr.bf16.mxu0 %v1416_v46  ;;  %1291 = vmatprep.subr.bf16.mxu1 %v1417_v47 }
  0x2f   :  { %1270 = vmatpush3.bf16.msra.mxu0 %v1418_v48  ;;  %1292 = vmatpush3.bf16.msra.mxu1 %v1419_v49  ;;  %v1438_v49 = vld [vmem:[%s1855_s5] sm:$0xff]  }
  0x30   :  { %1271 = vmatprep.subr.bf16.mxu0 %v1420_v50  ;;  %1293 = vmatprep.subr.bf16.mxu1 %v1421_v51  ;;  %v1439_v50 = vld [vmem:[%s1855_s5 + $0x80] sm:$0xff]  }
  0x33   :  { %1272 = vmatpush3.bf16.msra.mxu0 %v1422_v52  ;;  %1294 = vmatpush3.bf16.msra.mxu1 %v1423_v53  ;;  %v1440_v52 = vld [vmem:[%s1855_s5 + $0x48] sm:$0xff]  }
  0x34   :  { %1273 = vmatprep.subr.bf16.mxu0 %v1424_v54  ;;  %1295 = vmatprep.subr.bf16.mxu1 %v1425_v55  ;;  %v1441_v53 = vld [vmem:[%s1855_s5 + $0xc8] sm:$0xff]  }
  0x37   :  { %1274 = vmatpush3.bf16.msra.mxu0 %v1426_v56  ;;  %1296 = vmatpush3.bf16.msra.mxu1 %v1427_v57  ;;  %v1442_v56 = vld [vmem:[%s1855_s5 + $0x8] sm:$0xff]  }
  0x38   :  { %1275 = vmatprep.subr.bf16.mxu0 %v1428_v58  ;;  %1297 = vmatprep.subr.bf16.mxu1 %v1429_v59  ;;  %v1443_v57 = vld [vmem:[%s1855_s5 + $0x88] sm:$0xff]   ;;  %v1444_v58 = vld [vmem:[%s1855_s5 + $0x50] sm:$0xff]  }
  0x39   :  { %v1445_v59 = vld [vmem:[%s1855_s5 + $0xd0] sm:$0xff]  }
  0x3b   :  { %1276 = vmatpush3.bf16.msra.mxu0 %v1430_v60  ;;  %1298 = vmatpush3.bf16.msra.mxu1 %v1431_v61  ;;  %v1446_v60 = vld [vmem:[%s1855_s5 + $0x10] sm:$0xff]  }
  0x3c   :  { %1277 = vmatprep.subr.bf16.mxu0 %v1432_v62  ;;  %1299 = vmatprep.subr.bf16.mxu1 %v1433_v63  ;;  %v1447_v61 = vld [vmem:[%s1855_s5 + $0x90] sm:$0xff]   ;;  %v1448_v62 = vld [vmem:[%s1855_s5 + $0x58] sm:$0xff]  }
  0x3d   :  { %v1449_v63 = vld [vmem:[%s1855_s5 + $0xd8] sm:$0xff]  }
  0x3f   :  { %1278 = vmatpush3.bf16.msra.mxu0 %v1434_v0  ;;  %1300 = vmatpush3.bf16.msra.mxu1 %v1435_v1  ;;  %v1450_v0 = vld [vmem:[%s1855_s5 + $0x18] sm:$0xff]  }
  0x40   :  { %1307 = vmatprep.subr.bf16.mxu0 %v1436_v2  ;;  %1329 = vmatprep.subr.bf16.mxu1 %v1437_v3  ;;  %v1451_v1 = vld [vmem:[%s1855_s5 + $0x98] sm:$0xff]   ;;  %v1452_v2 = vld [vmem:[%s1855_s5 + $0x60] sm:$0xff]  }
  0x41   :  { %v1453_v3 = vld [vmem:[%s1855_s5 + $0xe0] sm:$0xff]  }
  0xe5   :  { %v1720_v4 = vpop.f32.mrb[0].mxu0  ;;  %v1722_v5 = vpop.f32.mrb[0].mxu1 }
  0xe6   :  { %v189_v7 = vpop.f32.mrb[1].mxu0  ;;  %v230_v8 = vpop.f32.mrb[1].mxu1  ;;  %v188_v19 = vadd.f32 %v1720_v4, %v52_v14  ;;  %v1467_v4 = vld [vmem:[%s1855_s5 + $0xb8] sm:$0xff]  }
  0xe7   :  { %v191_v9 = vpop.f32.mrb[2].mxu0  ;;  %v232_v10 = vpop.f32.mrb[2].mxu1  ;;  %v190_v28 = vadd.f32 %v189_v7, %v56_v20  ;;  %v231_v29 = vadd.f32 %v230_v8, %v64_v21  ;;  %v1454_v7 = vld [vmem:[%s1855_s5 + $0x20] sm:$0xff]   ;;  %v1461_v20 = vld [vmem:[%s1855_s5 + $0xf0] sm:$0xff]   ;;  %v229_v21 = vadd.f32 %v1722_v5, %v60_v15 }
  0xe8   :  { %v192_v11 = vpop.f32.mrb[3].mxu0  ;;  %v233_v12 = vpop.f32.mrb[3].mxu1  ;;  %v1455_v8 = vld [vmem:[%s1855_s5 + $0xa0] sm:$0xff]   ;;  %v1456_v9 = vld [vmem:[%s1855_s5 + $0x68] sm:$0xff]   ;;  %v235_v5 = vmax.f32 %v188_v19, 0.0 }
  0xe9   :  { %v236_v44 = vmax.f32 %v190_v28, 0.0  ;;  %v238_v45 = vmax.f32 %v231_v29, 0.0  ;;  %v1457_v10 = vld [vmem:[%s1855_s5 + $0xe8] sm:$0xff]   ;;  %v1469_v28 = vmov 6  }
  0xea   :  { %v1458_v11 = vld [vmem:[%s1855_s5 + $0x28] sm:$0xff]   ;;  %1355 = vset.pattern.permute.xlu0 %v1469_v28 }
  0xeb   :  { %v240_v54 = vpack.c.bf16 %v236_v44, %v236_v44  ;;  %v242_v55 = vpack.c.bf16 %v238_v45, %v238_v45  ;;  %v1459_v12 = vld [vmem:[%s1855_s5 + $0xa8] sm:$0xff]  }
  0xf5   :  { %v395_v26 = vpop.f32.mrb[4].mxu0  ;;  %v436_v27 = vpop.f32.mrb[4].mxu1 }
  0xf6   :  { %v396_v30 = vadd.f32 %v395_v26, %v264_v22  ;;  %v437_v31 = vadd.f32 %v436_v27, %v272_v23  ;;  %v397_v32 = vpop.f32.mrb[5].mxu0  ;;  %v438_v33 = vpop.f32.mrb[5].mxu1  ;;  %v1464_v22 = vld [vmem:[%s1855_s5 + $0x78] sm:$0xff]   ;;  %v239_v26 = vpack.c.bf16 %v235_v5, %v235_v5 }
  0xf7   :  { %v398_v34 = vadd.f32 %v397_v32, %v268_v24  ;;  %v439_v35 = vadd.f32 %v438_v33, %v276_v25  ;;  %v399_v36 = vpop.f32.mrb[6].mxu0  ;;  %v440_v37 = vpop.f32.mrb[6].mxu1  ;;  %v1465_v23 = vld [vmem:[%s1855_s5 + $0xf8] sm:$0xff]   ;;  %v237_v25 = vmax.f32 %v229_v21, 0.0 }
  0xf8   :  { %v443_v38 = vmax.f32 %v396_v30, 0.0  ;;  %v445_v39 = vmax.f32 %v437_v31, 0.0  ;;  %v400_v40 = vpop.f32.mrb[7].mxu0  ;;  %v441_v41 = vpop.f32.mrb[7].mxu1  ;;  %v1466_v24 = vld [vmem:[%s1855_s5 + $0x38] sm:$0xff]  }
  0xf9   :  { %v444_v42 = vmax.f32 %v398_v34, 0.0  ;;  %v446_v43 = vmax.f32 %v439_v35, 0.0  ;;  %v241_v27 = vpack.c.bf16 %v237_v25, %v237_v25 }
  0xfa   :  { %v449_v46 = vpack.c.bf16 %v445_v39, %v445_v39  ;;  %v447_v51 = vpack.c.bf16 %v443_v38, %v443_v38 }
  0xfb   :  { %v448_v47 = vpack.c.bf16 %v444_v42, %v444_v42  ;;  %v450_v48 = vpack.c.bf16 %v446_v43, %v446_v43  ;;  %v1134_v42 = vand.u32 127, %v49_v6 }
  0xfd   :  { %803 = vmatprep.mubr.bf16.mxu0 %v448_v47  ;;  %843 = vmatprep.mubr.bf16.mxu1 %v450_v48  ;;  %vm1136_vm2 = vcmp.lt.s32.totalorder %v1134_v42, 6 }
  0xfe   :  { %804 = vmatmul.mubr.bf16.vlgmr.msra.gmra.mrb[8].mxu0 %v447_v51  ;;  %844 = vmatmul.mubr.bf16.vlgmr.msra.gmra.mrb[8].mxu1 %v449_v46  ;;  %vm1137_vm3 = vmand %vm1135_vm1, %vm1136_vm2 }
  0xff   :  { %1308 = vmatpush3.bf16.msra.mxu0 %v1438_v49  ;;  %1330 = vmatpush3.bf16.msra.mxu1 %v1439_v50 }
 0x100   :  { %1075 = vmatprep.mubr.bf16.mxu0 %v240_v54  ;;  %1115 = vmatprep.mubr.bf16.mxu1 %v242_v55 }
 0x101   :  { %1309 = vmatprep.subr.bf16.mxu0 %v1440_v52  ;;  %1331 = vmatprep.subr.bf16.mxu1 %v1441_v53  ;;  %v1262_v52 = vld [vmem:[%s1858_s7] ss:$0 sm:$0xff] }
 0x103   :  { %1310 = vmatpush3.bf16.msra.mxu0 %v1442_v56  ;;  %1332 = vmatpush3.bf16.msra.mxu1 %v1443_v57 }
 0x104   :  { %1311 = vmatprep.subr.bf16.mxu0 %v1444_v58  ;;  %1333 = vmatprep.subr.bf16.mxu1 %v1445_v59 }
 0x107   :  { %1312 = vmatpush3.bf16.msra.mxu0 %v1446_v60  ;;  %1334 = vmatpush3.bf16.msra.mxu1 %v1447_v61 }
 0x108   :  { %1313 = vmatprep.subr.bf16.mxu0 %v1448_v62  ;;  %1335 = vmatprep.subr.bf16.mxu1 %v1449_v63 }
 0x10b   :  { %1314 = vmatpush3.bf16.msra.mxu0 %v1450_v0  ;;  %1336 = vmatpush3.bf16.msra.mxu1 %v1451_v1 }
 0x10c   :  { %1315 = vmatprep.subr.bf16.mxu0 %v1452_v2  ;;  %1337 = vmatprep.subr.bf16.mxu1 %v1453_v3 }
 0x10f   :  { %1316 = vmatpush3.bf16.msra.mxu0 %v1454_v7  ;;  %1338 = vmatpush3.bf16.msra.mxu1 %v1455_v8 }
 0x110   :  { %1317 = vmatprep.subr.bf16.mxu0 %v1456_v9  ;;  %1339 = vmatprep.subr.bf16.mxu1 %v1457_v10 }
 0x113   :  { %1318 = vmatpush3.bf16.msra.mxu0 %v1458_v11  ;;  %1340 = vmatpush3.bf16.msra.mxu1 %v1459_v12 }
 0x114   :  { %1319 = vmatprep.subr.bf16.mxu0 %v1460_v17  ;;  %1341 = vmatprep.subr.bf16.mxu1 %v1461_v20 }
 0x117   :  { %1320 = vmatpush3.bf16.msra.mxu0 %v1462_v18  ;;  %1342 = vmatpush3.bf16.msra.mxu1 %v1463_v16 }
 0x118   :  { %1321 = vmatprep.subr.bf16.mxu0 %v1464_v22  ;;  %1343 = vmatprep.subr.bf16.mxu1 %v1465_v23 }
 0x11b   :  { %1322 = vmatpush3.bf16.msra.mxu0 %v1466_v24  ;;  %1344 = vmatpush3.bf16.msra.mxu1 %v1467_v4 }
 0x11e   :  { %1076 = vmatmul.mubr.bf16.vlgmr.msra.gmra.mrb[12].mxu0 %v239_v26  ;;  %1116 = vmatmul.mubr.bf16.vlgmr.msra.gmra.mrb[12].mxu1 %v241_v27 }
 0x1d1   :  { %v1279_v29 = vpop.f32.mrb[8].mxu0  ;;  %v1301_v30 = vpop.f32.mrb[8].mxu1 }
 0x1d2   :  { %v1280_v31 = vpop.f32.mrb[9].mxu0  ;;  %v1302_v32 = vpop.f32.mrb[9].mxu1 }
 0x1d3   :  { %v1281_v33 = vadd.f32 %v1280_v31, %v1279_v29  ;;  %v1303_v34 = vadd.f32 %v1302_v32, %v1301_v30  ;;  %v1282_v35 = vpop.f32.mrb[10].mxu0  ;;  %v1304_v36 = vpop.f32.mrb[10].mxu1 }
 0x1d4   :  { %v1283_v37 = vpop.f32.mrb[11].mxu0  ;;  %v1305_v38 = vpop.f32.mrb[11].mxu1 }
 0x1d5   :  { %v846_v39 = vadd.f32 %v1303_v34, %v1281_v33 }
 0x1f1   :  { %v1323_v40 = vpop.f32.mrb[12].mxu0  ;;  %v1345_v41 = vpop.f32.mrb[12].mxu1 }
 0x1f2   :  { %v1324_v43 = vpop.f32.mrb[13].mxu0  ;;  %v1346_v44 = vpop.f32.mrb[13].mxu1 }
 0x1f3   :  { %v1325_v45 = vadd.f32 %v1324_v43, %v1323_v40  ;;  %v1347_v46 = vadd.f32 %v1346_v44, %v1345_v41  ;;  %v1326_v47 = vpop.f32.mrb[14].mxu0  ;;  %v1348_v48 = vpop.f32.mrb[14].mxu1 }
 0x1f4   :  { %v1327_v49 = vpop.f32.mrb[15].mxu0  ;;  %v1349_v50 = vpop.f32.mrb[15].mxu1 }
 0x1f5   :  { %v1078_v51 = vadd.f32 %v1325_v45, %v846_v39 }
 0x1f7   :  { %v1118_v53 = vadd.f32 %v1347_v46, %v1078_v51 }
 0x1f9   :  { %v1130_v54 = vadd.f32 %v1262_v52, %v1118_v53 }
 0x1fb   :  { %v1138_v6 = vsel %vm1137_vm3, %v1130_v54, 0.0 }
 0x1fc   :  { %1139 = vadd.xlane.f32.xlu0 %v1138_v6 }
 0x212   :  { %1151 = vperm.xlu0 %1355, %v1130_v54  }
 0x289   :  { %v1140_v55 = vpop.xlane.xlu0 %1139 }
 0x28a   :  { %v1141_v56 = vrot.slane %v1140_v55, 4 }
 0x28c   :  { %v1142_v57 = vadd.f32 %v1141_v56, %v1140_v55 }
 0x28e   :  { %v1143_v58 = vrot.slane %v1142_v57, 2 }
 0x290   :  { %v1144_v59 = vadd.f32 %v1143_v58, %v1142_v57 }
 0x291   :  { %v1152_v13 = vpop.permute.xlu0 %1151 }
 0x292   :  { %v1145_v60 = vrot.slane %v1144_v59, 1  ;;  %v1154_v62 = vadd.f32 %v1152_v13, %v1130_v54 }
 0x294   :  { %v1146_v61 = vadd.f32 %v1145_v60, %v1144_v59 }
 0x296   :  { %1351 = vpush %v1146_v61 }
 0x2c7   :  { %s1352_s23 = spop %1351 }
 0x2c8   :  { %s1148_s24 = smul.f32 0.083333336, %s1352_s23 }
 0x2ca   :  { %v1155_v63 = vstv %s1148_s24 }
 0x2cb   :  { %v1156_v0 = vsub.f32 %v1154_v62, %v1155_v63 }
 0x2cd   :  { %1157 = vst [vmem:[%s1859_s8] sm:$0xff] %v1156_v0 }

</bundles_post_ra>
